<compile_context>
chip_gen: v7x
topology: tpu7x:2x2x1
jax: 0.10.0
libtpu: 0.0.40
codegen_flags: <defaults>
</compile_context>

<pallas_src>
import functools

import jax
import jax.numpy as jnp
from jax.experimental import pallas as pl
from jax.experimental.pallas import tpu as pltpu


# Static tap table: (row offset dh, lane shift sh), sh = 2 - kw.
_TAPS = ((0, 2), (0, 1), (0, 0), (1, 2), (1, 1), (1, 0))


# ---------------------------------------------------------------------------
# Kernel 1: sub-pixel transposed conv (one output-row parity per grid step)
#           + fused per-tile BatchNorm partial statistics
# ---------------------------------------------------------------------------
def convT_kernel(xm_ref, xh_ref, w_ref, mask_ref, y_ref, stat_ref, xt_ref, *,
                 RT, Pd):
    # xm_ref  : (1, Cin, RT*Pd)      row tile of W-dilated, padded input (flat)
    # xh_ref  : (1, Cin, 8*Pd)       next 8 rows (only first row + 2 elems used)
    # w_ref   : (1, 6, Cout, Cin)    per-parity tap weights (unused taps are 0)
    # mask_ref: (1, RT*Pd)           1.0 on valid output columns, 0.0 on row pad
    # y_ref   : (1, 1, Cout, RT*Pd)  conv output plane (this batch/parity/tile)
    # stat_ref: (1, 1, 1, Cout, 2)   per-tile per-channel [sum, sum_sq]
    # xt_ref  : (Cin, RT*Pd + Pd+2)  VMEM scratch: tile + one halo row
    L = RT * Pd
    Cout = y_ref.shape[2]

    # assemble the contiguous (tile + halo-row) slab once in VMEM
    xt_ref[:, :L] = xm_ref[0]
    xt_ref[:, L:] = xh_ref[0, :, :Pd + 2]

    # accumulate the (up to) 6 taps of this row parity; each dot is
    # (Cout, Cin) x (Cin, RT*Pd) so the output is lane-dense in the spatial dim.
    acc = jnp.zeros((Cout, L), jnp.float32)
    for t, (dh, sh) in enumerate(_TAPS):
        s = dh * Pd + sh
        acc = acc + jnp.dot(w_ref[0, t], xt_ref[:, s:s + L],
                            preferred_element_type=jnp.float32)

    # zero the per-row padding columns so they do not pollute the BN statistics
    acc = acc * mask_ref[...]

    y_ref[0, 0] = acc
    # lane-axis (all-lanes-active) reductions for the fused BN statistics
    stat_ref[0, 0, 0, :, 0:1] = jnp.sum(acc, axis=1, keepdims=True)
    stat_ref[0, 0, 0, :, 1:2] = jnp.sum(acc * acc, axis=1, keepdims=True)


# ---------------------------------------------------------------------------
# Kernel 2: tiled BatchNorm apply (scale/shift precomputed) + PReLU
# ---------------------------------------------------------------------------
def bn_prelu_kernel(x_ref, sc_ref, sh_ref, al_ref, o_ref, *, OW):
    # x_ref : (1, 2, Cout, RB, Pd)   both row parities of a row tile
    # sc/sh/al : (Cout, 1, 1)        per-channel scale / shift / PReLU alpha
    # o_ref : (1, Cout, RB, 2, OW)   final output tile, NCHW-ordered (free reshape)
    sc = sc_ref[...]
    sh = sh_ref[...]
    al = al_ref[...]
    for ph in range(2):
        y = x_ref[0, ph, :, :, :OW] * sc + sh
        o_ref[0, :, :, ph, :] = jnp.where(y > 0, y, al * y)


# ---------------------------------------------------------------------------
# Wrapper: upCBR.forward
# ---------------------------------------------------------------------------
def upcbr_forward(x, w_t, gamma, beta, alpha, *, stride=2, eps=1e-3):
    N, Cin, H, W = x.shape
    Cin_w, Cout, K, _ = w_t.shape
    assert Cin == Cin_w
    assert K == 3 and stride == 2, "kernel specialized to kSize=3, stride=2"

    RT = 8                       # input rows per conv grid step (multiple of 8)
    assert H % RT == 0
    T = H // RT
    OH, OW = 2 * H, 2 * W
    Pd = ((2 * W + 2 + 15) // 16) * 16   # padded (W-dilated) row pitch
    L = RT * Pd

    x = x.astype(jnp.float32)
    w_t = w_t.astype(jnp.float32)
    # TODO(synk): for v6e/v5e, bf16 storage of x / conv intermediate (f32 accum)
    # would halve HBM traffic; kept f32 here to stay safely within 1e-3 tolerance.

    # --- W-dilated, padded input: data at odd lane positions of each row ------
    # pd[n, ci, r, 1 + 2*c] = x[n, ci, r, c]; RT extra zero rows for the halo.
    zero = jnp.zeros((), jnp.float32)
    xp = jax.lax.pad(x, zero, ((0, 0, 0), (0, 0, 0), (0, RT, 0),
                               (1, Pd - 2 * W, 1)))
    xflat = xp.reshape(N, Cin, (H + RT) * Pd)          # pure (free) reshape

    # --- per-parity tap weights --------------------------------------------
    # parity 0 (even output rows): kh=1 taps (dh=0); dh=1 taps zeroed.
    # parity 1 (odd  output rows): kh=2 taps (dh=0) and kh=0 taps (dh=1).
    wT = jnp.transpose(w_t, (1, 0, 2, 3))              # (Cout, Cin, K, K)
    zeros3 = jnp.zeros((Cout, Cin, 3), jnp.float32)
    w_even = jnp.concatenate([wT[:, :, 1, :], zeros3], axis=-1)         # (Cout,Cin,6)
    w_odd = jnp.concatenate([wT[:, :, 2, :], wT[:, :, 0, :]], axis=-1)  # (Cout,Cin,6)
    warr = jnp.transpose(jnp.stack([w_even, w_odd], axis=0), (0, 3, 1, 2))  # (2,6,Cout,Cin)

    # validity mask over a flat row tile (zero on the per-row pad columns)
    mask = ((jnp.arange(L, dtype=jnp.int32) % Pd) < OW).astype(jnp.float32)
    mask = mask.reshape(1, L)

    # --- Pallas kernel 1: conv + fused BN partial stats ----------------------
    conv_out, stats = pl.pallas_call(
        functools.partial(convT_kernel, RT=RT, Pd=Pd),
        grid=(N, T, 2),
        in_specs=[
            pl.BlockSpec((1, Cin, L), lambda n, i, ph: (n, 0, i)),
            pl.BlockSpec((1, Cin, 8 * Pd),
                         lambda n, i, ph: (n, 0, (i + 1) * (RT // 8))),
            pl.BlockSpec((1, 6, Cout, Cin), lambda n, i, ph: (ph, 0, 0, 0)),
            pl.BlockSpec((1, L), lambda n, i, ph: (0, 0)),
        ],
        out_specs=[
            pl.BlockSpec((1, 1, Cout, L), lambda n, i, ph: (n, ph, 0, i)),
            pl.BlockSpec((1, 1, 1, Cout, 2), lambda n, i, ph: (n, ph, i, 0, 0)),
        ],
        out_shape=[
            jax.ShapeDtypeStruct((N, 2, Cout, H * Pd), jnp.float32),
            jax.ShapeDtypeStruct((N, 2, T, Cout, 2), jnp.float32),
        ],
        scratch_shapes=[pltpu.VMEM((Cin, L + Pd + 2), jnp.float32)],
        compiler_params=pltpu.CompilerParams(
            dimension_semantics=("parallel", "parallel", "arbitrary")),
    )(xflat, xflat, warr, mask)

    # --- tiny per-channel BN parameter math (training-mode batch stats) ------
    s = jnp.sum(stats, axis=(0, 1, 2))                 # (Cout, 2)
    cnt = jnp.float32(N * OH * OW)
    mean = s[:, 0] / cnt
    var = s[:, 1] / cnt - mean * mean                  # biased (train-mode) variance
    inv = jax.lax.rsqrt(var + eps)
    g = gamma.astype(jnp.float32)
    scale = (g * inv).reshape(Cout, 1, 1)
    shift = (beta.astype(jnp.float32) - mean * g * inv).reshape(Cout, 1, 1)
    alpha3 = alpha.astype(jnp.float32).reshape(Cout, 1, 1)
    # TODO(synk): running_mean / running_var side-effect updates of nn.BatchNorm2d
    # are training bookkeeping and do not affect the forward output; omitted.

    # --- Pallas kernel 2: tiled BN apply + PReLU, writes NCHW-ordered output --
    inter5 = conv_out.reshape(N, 2, Cout, H, Pd)       # pure (free) reshape
    RB = RT
    out5 = pl.pallas_call(
        functools.partial(bn_prelu_kernel, OW=OW),
        grid=(N, T),
        in_specs=[
            pl.BlockSpec((1, 2, Cout, RB, Pd), lambda n, j: (n, 0, 0, j, 0)),
            pl.BlockSpec((Cout, 1, 1), lambda n, j: (0, 0, 0)),
            pl.BlockSpec((Cout, 1, 1), lambda n, j: (0, 0, 0)),
            pl.BlockSpec((Cout, 1, 1), lambda n, j: (0, 0, 0)),
        ],
        out_specs=pl.BlockSpec((1, Cout, RB, 2, OW), lambda n, j: (n, 0, j, 0, 0)),
        out_shape=jax.ShapeDtypeStruct((N, Cout, H, 2, OW), jnp.float32),
        compiler_params=pltpu.CompilerParams(
            dimension_semantics=("parallel", "parallel")),
    )(inter5, scale, shift, alpha3)

    # (N, Cout, H, 2, OW) -> (N, Cout, 2H, OW) is a pure row-major reshape (free)
    return out5.reshape(N, Cout, OH, OW)


if __name__ == "__main__":
    # upCBR(nIn=4, nOut=8, kSize=3, stride=2) at small shapes
    N, nIn, nOut, K, H, W = 2, 4, 8, 3, 16, 16
    stride = 2
    p = (K - 1) // 2

    key = jax.random.PRNGKey(0)
    kx, kw = jax.random.split(key)
    x = jax.random.normal(kx, (N, nIn, H, W), jnp.float32)
    # ConvTranspose2d weight shape: (nIn, nOut, K, K), bias=False
    w = jax.random.normal(kw, (nIn, nOut, K, K), jnp.float32) * 0.1
    gamma = jnp.ones((nOut,), jnp.float32)          # BatchNorm weight init
    beta = jnp.zeros((nOut,), jnp.float32)          # BatchNorm bias init
    alpha = jnp.full((nOut,), 0.25, jnp.float32)    # PReLU default init

    out = jax.jit(upcbr_forward)(x, w, gamma, beta, alpha)
    out = jax.block_until_ready(out)
    assert out.shape == (N, nOut, 2 * H, 2 * W), out.shape

    # pure-JAX reference (XLA conv with lhs dilation == ConvTranspose2d)
    w_oihw = jnp.transpose(w, (1, 0, 2, 3))[:, :, ::-1, ::-1]
    conv_ref = jax.lax.conv_general_dilated(
        x, w_oihw, window_strides=(1, 1),
        padding=[(K - 1 - p, K - 1 - p + p), (K - 1 - p, K - 1 - p + p)],
        lhs_dilation=(stride, stride),
        dimension_numbers=("NCHW", "OIHW", "NCHW"),
    )
    mean = conv_ref.mean(axis=(0, 2, 3), keepdims=True)
    var = ((conv_ref - mean) ** 2).mean(axis=(0, 2, 3), keepdims=True)
    yref = (conv_ref - mean) / jnp.sqrt(var + 1e-3)
    yref = yref * gamma[None, :, None, None] + beta[None, :, None, None]
    ref = jnp.where(yref > 0, yref, alpha[None, :, None, None] * yref)

    assert bool(jnp.allclose(out, ref, rtol=1e-3, atol=1e-3)), "mismatch vs reference"
    print("KERNEL_OK")
</pallas_src>

<mosaic_0001>
module attributes {stable_mosaic.version = 11 : i64} {
  func.func @convT_kernel(%arg0: i32, %arg1: i32, %arg2: i32, %arg3: memref<1x4x384xf32, #tpu.memory_space<vmem>>, %arg4: memref<1x4x384xf32, #tpu.memory_space<vmem>>, %arg5: memref<1x6x8x4xf32, #tpu.memory_space<vmem>>, %arg6: memref<1x384xf32, #tpu.memory_space<vmem>>, %arg7: memref<1x1x8x384xf32, #tpu.memory_space<vmem>>, %arg8: memref<1x1x1x8x2xf32, #tpu.memory_space<vmem>>, %arg9: memref<4x434xf32, #tpu.memory_space<vmem>>) attributes {dimension_semantics = [#tpu.dimension_semantics<parallel>, #tpu.dimension_semantics<parallel>, #tpu.dimension_semantics<arbitrary>], iteration_bounds = array<i64: 2, 2, 2>, scalar_prefetch = 0 : i64, scratch_operands = 1 : i64, tpu.core_type = #tpu.core_type<tc>, window_params = [{transform_indices = @transform_0, window_bounds = array<i64: 1, 4, 384>}, {transform_indices = @transform_1, window_bounds = array<i64: 1, 4, 384>}, {transform_indices = @transform_2, window_bounds = array<i64: 1, 6, 8, 4>}, {pipeline_mode = #tpu.pipeline_mode<synchronous>, transform_indices = @transform_3, window_bounds = array<i64: 1, 384>}, {transform_indices = @transform_4, window_bounds = array<i64: 1, 1, 8, 384>}, {transform_indices = @transform_5, window_bounds = array<i64: 1, 1, 1, 8, 2>}]} {
    %c0 = arith.constant 0 : index
    %c0_0 = arith.constant 0 : index
    %c0_1 = arith.constant 0 : index
    %0 = vector.load %arg3[%c0, %c0_0, %c0_1] : memref<1x4x384xf32, #tpu.memory_space<vmem>>, vector<1x4x384xf32>
    %1 = vector.shape_cast %0 : vector<1x4x384xf32> to vector<4x384xf32>
    %c0_2 = arith.constant 0 : index
    %c0_3 = arith.constant 0 : index
    %2 = vector.load %arg9[%c0_2, %c0_3] : memref<4x434xf32, #tpu.memory_space<vmem>>, vector<4x384xf32>
    tpu.vector_store %arg9[%c0_2, %c0_3], %1 {strides = array<i32>} : memref<4x434xf32, #tpu.memory_space<vmem>>, vector<4x384xf32>,
    %c0_4 = arith.constant 0 : index
    %c0_5 = arith.constant 0 : index
    %c0_6 = arith.constant 0 : index
    %3 = vector.load %arg4[%c0_4, %c0_5, %c0_6] : memref<1x4x384xf32, #tpu.memory_space<vmem>>, vector<1x4x50xf32>
    %4 = vector.shape_cast %3 : vector<1x4x50xf32> to vector<4x50xf32>
    %c0_7 = arith.constant 0 : index
    %c384 = arith.constant 384 : index
    %5 = vector.load %arg9[%c0_7, %c384] : memref<4x434xf32, #tpu.memory_space<vmem>>, vector<4x50xf32>
    tpu.vector_store %arg9[%c0_7, %c384], %4 {strides = array<i32>} : memref<4x434xf32, #tpu.memory_space<vmem>>, vector<4x50xf32>,
    %cst = arith.constant 0.000000e+00 : f32
    %6 = vector.broadcast %cst : f32 to vector<8x384xf32>
    %c0_8 = arith.constant 0 : index
    %c0_9 = arith.constant 0 : index
    %c0_10 = arith.constant 0 : index
    %c0_11 = arith.constant 0 : index
    %7 = vector.load %arg5[%c0_8, %c0_9, %c0_10, %c0_11] : memref<1x6x8x4xf32, #tpu.memory_space<vmem>>, vector<1x1x8x4xf32>
    %8 = vector.shape_cast %7 : vector<1x1x8x4xf32> to vector<8x4xf32>
    %c0_12 = arith.constant 0 : index
    %c2 = arith.constant 2 : index
    %9 = vector.load %arg9[%c0_12, %c2] : memref<4x434xf32, #tpu.memory_space<vmem>>, vector<4x384xf32>
    %cst_13 = arith.constant dense<0.000000e+00> : vector<8x384xf32>
    %10 = tpu.matmul %8, %9, %cst_13 {dimension_numbers = #tpu.dot_dimension_numbers<[1], [0], [0], [1], [0, 0, 1, 1], [], []>} : vector<8x4xf32>, vector<4x384xf32>, vector<8x384xf32> -> vector<8x384xf32>
    %11 = arith.addf %6, %10 : vector<8x384xf32>
    %c0_14 = arith.constant 0 : index
    %c1 = arith.constant 1 : index
    %c0_15 = arith.constant 0 : index
    %c0_16 = arith.constant 0 : index
    %12 = vector.load %arg5[%c0_14, %c1, %c0_15, %c0_16] : memref<1x6x8x4xf32, #tpu.memory_space<vmem>>, vector<1x1x8x4xf32>
    %13 = vector.shape_cast %12 : vector<1x1x8x4xf32> to vector<8x4xf32>
    %c0_17 = arith.constant 0 : index
    %c1_18 = arith.constant 1 : index
    %14 = vector.load %arg9[%c0_17, %c1_18] : memref<4x434xf32, #tpu.memory_space<vmem>>, vector<4x384xf32>
    %cst_19 = arith.constant dense<0.000000e+00> : vector<8x384xf32>
    %15 = tpu.matmul %13, %14, %cst_19 {dimension_numbers = #tpu.dot_dimension_numbers<[1], [0], [0], [1], [0, 0, 1, 1], [], []>} : vector<8x4xf32>, vector<4x384xf32>, vector<8x384xf32> -> vector<8x384xf32>
    %16 = arith.addf %11, %15 : vector<8x384xf32>
    %c0_20 = arith.constant 0 : index
    %c2_21 = arith.constant 2 : index
    %c0_22 = arith.constant 0 : index
    %c0_23 = arith.constant 0 : index
    %17 = vector.load %arg5[%c0_20, %c2_21, %c0_22, %c0_23] : memref<1x6x8x4xf32, #tpu.memory_space<vmem>>, vector<1x1x8x4xf32>
    %18 = vector.shape_cast %17 : vector<1x1x8x4xf32> to vector<8x4xf32>
    %c0_24 = arith.constant 0 : index
    %c0_25 = arith.constant 0 : index
    %19 = vector.load %arg9[%c0_24, %c0_25] : memref<4x434xf32, #tpu.memory_space<vmem>>, vector<4x384xf32>
    %cst_26 = arith.constant dense<0.000000e+00> : vector<8x384xf32>
    %20 = tpu.matmul %18, %19, %cst_26 {dimension_numbers = #tpu.dot_dimension_numbers<[1], [0], [0], [1], [0, 0, 1, 1], [], []>} : vector<8x4xf32>, vector<4x384xf32>, vector<8x384xf32> -> vector<8x384xf32>
    %21 = arith.addf %16, %20 : vector<8x384xf32>
    %c0_27 = arith.constant 0 : index
    %c3 = arith.constant 3 : index
    %c0_28 = arith.constant 0 : index
    %c0_29 = arith.constant 0 : index
    %22 = vector.load %arg5[%c0_27, %c3, %c0_28, %c0_29] : memref<1x6x8x4xf32, #tpu.memory_space<vmem>>, vector<1x1x8x4xf32>
    %23 = vector.shape_cast %22 : vector<1x1x8x4xf32> to vector<8x4xf32>
    %c0_30 = arith.constant 0 : index
    %c50 = arith.constant 50 : index
    %24 = vector.load %arg9[%c0_30, %c50] : memref<4x434xf32, #tpu.memory_space<vmem>>, vector<4x384xf32>
    %cst_31 = arith.constant dense<0.000000e+00> : vector<8x384xf32>
    %25 = tpu.matmul %23, %24, %cst_31 {dimension_numbers = #tpu.dot_dimension_numbers<[1], [0], [0], [1], [0, 0, 1, 1], [], []>} : vector<8x4xf32>, vector<4x384xf32>, vector<8x384xf32> -> vector<8x384xf32>
    %26 = arith.addf %21, %25 : vector<8x384xf32>
    %c0_32 = arith.constant 0 : index
    %c4 = arith.constant 4 : index
    %c0_33 = arith.constant 0 : index
    %c0_34 = arith.constant 0 : index
    %27 = vector.load %arg5[%c0_32, %c4, %c0_33, %c0_34] : memref<1x6x8x4xf32, #tpu.memory_space<vmem>>, vector<1x1x8x4xf32>
    %28 = vector.shape_cast %27 : vector<1x1x8x4xf32> to vector<8x4xf32>
    %c0_35 = arith.constant 0 : index
    %c49 = arith.constant 49 : index
    %29 = vector.load %arg9[%c0_35, %c49] : memref<4x434xf32, #tpu.memory_space<vmem>>, vector<4x384xf32>
    %cst_36 = arith.constant dense<0.000000e+00> : vector<8x384xf32>
    %30 = tpu.matmul %28, %29, %cst_36 {dimension_numbers = #tpu.dot_dimension_numbers<[1], [0], [0], [1], [0, 0, 1, 1], [], []>} : vector<8x4xf32>, vector<4x384xf32>, vector<8x384xf32> -> vector<8x384xf32>
    %31 = arith.addf %26, %30 : vector<8x384xf32>
    %c0_37 = arith.constant 0 : index
    %c5 = arith.constant 5 : index
    %c0_38 = arith.constant 0 : index
    %c0_39 = arith.constant 0 : index
    %32 = vector.load %arg5[%c0_37, %c5, %c0_38, %c0_39] : memref<1x6x8x4xf32, #tpu.memory_space<vmem>>, vector<1x1x8x4xf32>
    %33 = vector.shape_cast %32 : vector<1x1x8x4xf32> to vector<8x4xf32>
    %c0_40 = arith.constant 0 : index
    %c48 = arith.constant 48 : index
    %34 = vector.load %arg9[%c0_40, %c48] : memref<4x434xf32, #tpu.memory_space<vmem>>, vector<4x384xf32>
    %cst_41 = arith.constant dense<0.000000e+00> : vector<8x384xf32>
    %35 = tpu.matmul %33, %34, %cst_41 {dimension_numbers = #tpu.dot_dimension_numbers<[1], [0], [0], [1], [0, 0, 1, 1], [], []>} : vector<8x4xf32>, vector<4x384xf32>, vector<8x384xf32> -> vector<8x384xf32>
    %36 = arith.addf %31, %35 : vector<8x384xf32>
    %c0_42 = arith.constant 0 : index
    %c0_43 = arith.constant 0 : index
    %37 = vector.load %arg6[%c0_42, %c0_43] : memref<1x384xf32, #tpu.memory_space<vmem>>, vector<1x384xf32>
    %38 = vector.broadcast %37 : vector<1x384xf32> to vector<8x384xf32>
    %39 = arith.mulf %36, %38 : vector<8x384xf32>
    %c0_44 = arith.constant 0 : index
    %c0_45 = arith.constant 0 : index
    %c0_46 = arith.constant 0 : index
    %c0_47 = arith.constant 0 : index
    %40 = vector.load %arg7[%c0_44, %c0_45, %c0_46, %c0_47] : memref<1x1x8x384xf32, #tpu.memory_space<vmem>>, vector<1x1x8x384xf32>
    %41 = vector.shape_cast %40 : vector<1x1x8x384xf32> to vector<8x384xf32>
    %42 = vector.shape_cast %39 : vector<8x384xf32> to vector<1x1x8x384xf32>
    tpu.vector_store %arg7[%c0_44, %c0_45, %c0_46, %c0_47], %42 {strides = array<i32>} : memref<1x1x8x384xf32, #tpu.memory_space<vmem>>, vector<1x1x8x384xf32>,
    %cst_48 = arith.constant dense<0.000000e+00> : vector<8xf32>
    %43 = vector.multi_reduction <add>, %39, %cst_48 [1] : vector<8x384xf32> to vector<8xf32>
    %44 = vector.shape_cast %43 : vector<8xf32> to vector<8x1xf32>
    %c0_49 = arith.constant 0 : index
    %c0_50 = arith.constant 0 : index
    %c0_51 = arith.constant 0 : index
    %c0_52 = arith.constant 0 : index
    %c0_53 = arith.constant 0 : index
    %45 = vector.load %arg8[%c0_49, %c0_50, %c0_51, %c0_52, %c0_53] : memref<1x1x1x8x2xf32, #tpu.memory_space<vmem>>, vector<1x1x1x8x1xf32>
    %46 = vector.shape_cast %45 : vector<1x1x1x8x1xf32> to vector<8x1xf32>
    %47 = vector.shape_cast %44 : vector<8x1xf32> to vector<1x1x1x8x1xf32>
    tpu.vector_store %arg8[%c0_49, %c0_50, %c0_51, %c0_52, %c0_53], %47 {strides = array<i32>} : memref<1x1x1x8x2xf32, #tpu.memory_space<vmem>>, vector<1x1x1x8x1xf32>,
    %48 = arith.mulf %39, %39 : vector<8x384xf32>
    %cst_54 = arith.constant dense<0.000000e+00> : vector<8xf32>
    %49 = vector.multi_reduction <add>, %48, %cst_54 [1] : vector<8x384xf32> to vector<8xf32>
    %50 = vector.shape_cast %49 : vector<8xf32> to vector<8x1xf32>
    %c0_55 = arith.constant 0 : index
    %c0_56 = arith.constant 0 : index
    %c0_57 = arith.constant 0 : index
    %c0_58 = arith.constant 0 : index
    %c1_59 = arith.constant 1 : index
    %51 = vector.load %arg8[%c0_55, %c0_56, %c0_57, %c0_58, %c1_59] : memref<1x1x1x8x2xf32, #tpu.memory_space<vmem>>, vector<1x1x1x8x1xf32>
    %52 = vector.shape_cast %51 : vector<1x1x1x8x1xf32> to vector<8x1xf32>
    %53 = vector.shape_cast %50 : vector<8x1xf32> to vector<1x1x1x8x1xf32>
    tpu.vector_store %arg8[%c0_55, %c0_56, %c0_57, %c0_58, %c1_59], %53 {strides = array<i32>} : memref<1x1x1x8x2xf32, #tpu.memory_space<vmem>>, vector<1x1x1x8x1xf32>,
    return
  }
  func.func @transform_0(%arg0: i32, %arg1: i32, %arg2: i32) -> (i32, i32, i32) {
    %c0_i32 = arith.constant 0 : i32
    %c0_i32_0 = arith.constant 0 : i32
    return %arg0, %c0_i32, %arg1 : i32, i32, i32
  }
  func.func @transform_1(%arg0: i32, %arg1: i32, %arg2: i32) -> (i32, i32, i32) {
    %c1_i32 = arith.constant 1 : i32
    %0 = arith.addi %arg1, %c1_i32 : i32
    %c1_i32_0 = arith.constant 1 : i32
    %1 = arith.muli %0, %c1_i32_0 : i32
    %c0_i32 = arith.constant 0 : i32
    %c0_i32_1 = arith.constant 0 : i32
    return %arg0, %c0_i32, %1 : i32, i32, i32
  }
  func.func @transform_2(%arg0: i32, %arg1: i32, %arg2: i32) -> (i32, i32, i32, i32) {
    %c0_i32 = arith.constant 0 : i32
    %c0_i32_0 = arith.constant 0 : i32
    %c0_i32_1 = arith.constant 0 : i32
    %c0_i32_2 = arith.constant 0 : i32
    return %arg2, %c0_i32, %c0_i32_0, %c0_i32_1 : i32, i32, i32, i32
  }
  func.func @transform_3(%arg0: i32, %arg1: i32, %arg2: i32) -> (i32, i32) {
    %c0_i32 = arith.constant 0 : i32
    %c0_i32_0 = arith.constant 0 : i32
    %c0_i32_1 = arith.constant 0 : i32
    return %c0_i32, %c0_i32_0 : i32, i32
  }
  func.func @transform_4(%arg0: i32, %arg1: i32, %arg2: i32) -> (i32, i32, i32, i32) {
    %c0_i32 = arith.constant 0 : i32
    %c0_i32_0 = arith.constant 0 : i32
    return %arg0, %arg2, %c0_i32, %arg1 : i32, i32, i32, i32
  }
  func.func @transform_5(%arg0: i32, %arg1: i32, %arg2: i32) -> (i32, i32, i32, i32, i32) {
    %c0_i32 = arith.constant 0 : i32
    %c0_i32_0 = arith.constant 0 : i32
    %c0_i32_1 = arith.constant 0 : i32
    return %arg0, %arg2, %arg1, %c0_i32, %c0_i32_0 : i32, i32, i32, i32, i32
  }
}

module attributes {stable_mosaic.version = 11 : i64} {
  func.func @bn_prelu_kernel(%arg0: i32, %arg1: i32, %arg2: memref<1x2x8x8x48xf32, #tpu.memory_space<vmem>>, %arg3: memref<8x1x1xf32, #tpu.memory_space<vmem>>, %arg4: memref<8x1x1xf32, #tpu.memory_space<vmem>>, %arg5: memref<8x1x1xf32, #tpu.memory_space<vmem>>, %arg6: memref<1x8x8x2x32xf32, #tpu.memory_space<vmem>>) attributes {dimension_semantics = [#tpu.dimension_semantics<parallel>, #tpu.dimension_semantics<parallel>], iteration_bounds = array<i64: 2, 2>, scalar_prefetch = 0 : i64, scratch_operands = 0 : i64, tpu.core_type = #tpu.core_type<tc>, window_params = [{transform_indices = @transform_0, window_bounds = array<i64: 1, 2, 8, 8, 48>}, {pipeline_mode = #tpu.pipeline_mode<synchronous>, transform_indices = @transform_1, window_bounds = array<i64: 8, 1, 1>}, {pipeline_mode = #tpu.pipeline_mode<synchronous>, transform_indices = @transform_2, window_bounds = array<i64: 8, 1, 1>}, {pipeline_mode = #tpu.pipeline_mode<synchronous>, transform_indices = @transform_3, window_bounds = array<i64: 8, 1, 1>}, {transform_indices = @transform_4, window_bounds = array<i64: 1, 8, 8, 2, 32>}]} {
    %c0 = arith.constant 0 : index
    %c0_0 = arith.constant 0 : index
    %c0_1 = arith.constant 0 : index
    %0 = vector.load %arg3[%c0, %c0_0, %c0_1] : memref<8x1x1xf32, #tpu.memory_space<vmem>>, vector<8x1x1xf32>
    %c0_2 = arith.constant 0 : index
    %c0_3 = arith.constant 0 : index
    %c0_4 = arith.constant 0 : index
    %1 = vector.load %arg4[%c0_2, %c0_3, %c0_4] : memref<8x1x1xf32, #tpu.memory_space<vmem>>, vector<8x1x1xf32>
    %c0_5 = arith.constant 0 : index
    %c0_6 = arith.constant 0 : index
    %c0_7 = arith.constant 0 : index
    %2 = vector.load %arg5[%c0_5, %c0_6, %c0_7] : memref<8x1x1xf32, #tpu.memory_space<vmem>>, vector<8x1x1xf32>
    %c0_8 = arith.constant 0 : index
    %c0_9 = arith.constant 0 : index
    %c0_10 = arith.constant 0 : index
    %c0_11 = arith.constant 0 : index
    %c0_12 = arith.constant 0 : index
    %3 = vector.load %arg2[%c0_8, %c0_9, %c0_10, %c0_11, %c0_12] : memref<1x2x8x8x48xf32, #tpu.memory_space<vmem>>, vector<1x1x8x8x32xf32>
    %4 = vector.shape_cast %3 : vector<1x1x8x8x32xf32> to vector<8x8x32xf32>
    %5 = vector.broadcast %0 : vector<8x1x1xf32> to vector<8x8x32xf32>
    %6 = arith.mulf %4, %5 : vector<8x8x32xf32>
    %7 = vector.broadcast %1 : vector<8x1x1xf32> to vector<8x8x32xf32>
    %8 = arith.addf %6, %7 : vector<8x8x32xf32>
    %cst = arith.constant 0.000000e+00 : f32
    %9 = vector.broadcast %cst : f32 to vector<8x8x32xf32>
    %10 = arith.cmpf ogt, %8, %9 : vector<8x8x32xf32>
    %11 = vector.broadcast %2 : vector<8x1x1xf32> to vector<8x8x32xf32>
    %12 = arith.mulf %11, %8 : vector<8x8x32xf32>
    %13 = arith.select %10, %8, %12 : vector<8x8x32xi1>, vector<8x8x32xf32>
    %c0_13 = arith.constant 0 : index
    %c0_14 = arith.constant 0 : index
    %c0_15 = arith.constant 0 : index
    %c0_16 = arith.constant 0 : index
    %c0_17 = arith.constant 0 : index
    %14 = vector.load %arg6[%c0_13, %c0_14, %c0_15, %c0_16, %c0_17] : memref<1x8x8x2x32xf32, #tpu.memory_space<vmem>>, vector<1x8x8x1x32xf32>
    %15 = vector.shape_cast %14 : vector<1x8x8x1x32xf32> to vector<8x8x32xf32>
    %16 = vector.shape_cast %13 : vector<8x8x32xf32> to vector<1x8x8x1x32xf32>
    tpu.vector_store %arg6[%c0_13, %c0_14, %c0_15, %c0_16, %c0_17], %16 {strides = array<i32>} : memref<1x8x8x2x32xf32, #tpu.memory_space<vmem>>, vector<1x8x8x1x32xf32>,
    %c0_18 = arith.constant 0 : index
    %c1 = arith.constant 1 : index
    %c0_19 = arith.constant 0 : index
    %c0_20 = arith.constant 0 : index
    %c0_21 = arith.constant 0 : index
    %17 = vector.load %arg2[%c0_18, %c1, %c0_19, %c0_20, %c0_21] : memref<1x2x8x8x48xf32, #tpu.memory_space<vmem>>, vector<1x1x8x8x32xf32>
    %18 = vector.shape_cast %17 : vector<1x1x8x8x32xf32> to vector<8x8x32xf32>
    %19 = vector.broadcast %0 : vector<8x1x1xf32> to vector<8x8x32xf32>
    %20 = arith.mulf %18, %19 : vector<8x8x32xf32>
    %21 = vector.broadcast %1 : vector<8x1x1xf32> to vector<8x8x32xf32>
    %22 = arith.addf %20, %21 : vector<8x8x32xf32>
    %cst_22 = arith.constant 0.000000e+00 : f32
    %23 = vector.broadcast %cst_22 : f32 to vector<8x8x32xf32>
    %24 = arith.cmpf ogt, %22, %23 : vector<8x8x32xf32>
    %25 = vector.broadcast %2 : vector<8x1x1xf32> to vector<8x8x32xf32>
    %26 = arith.mulf %25, %22 : vector<8x8x32xf32>
    %27 = arith.select %24, %22, %26 : vector<8x8x32xi1>, vector<8x8x32xf32>
    %c0_23 = arith.constant 0 : index
    %c0_24 = arith.constant 0 : index
    %c0_25 = arith.constant 0 : index
    %c1_26 = arith.constant 1 : index
    %c0_27 = arith.constant 0 : index
    %28 = vector.load %arg6[%c0_23, %c0_24, %c0_25, %c1_26, %c0_27] : memref<1x8x8x2x32xf32, #tpu.memory_space<vmem>>, vector<1x8x8x1x32xf32>
    %29 = vector.shape_cast %28 : vector<1x8x8x1x32xf32> to vector<8x8x32xf32>
    %30 = vector.shape_cast %27 : vector<8x8x32xf32> to vector<1x8x8x1x32xf32>
    tpu.vector_store %arg6[%c0_23, %c0_24, %c0_25, %c1_26, %c0_27], %30 {strides = array<i32>} : memref<1x8x8x2x32xf32, #tpu.memory_space<vmem>>, vector<1x8x8x1x32xf32>,
    return
  }
  func.func @transform_0(%arg0: i32, %arg1: i32) -> (i32, i32, i32, i32, i32) {
    %c0_i32 = arith.constant 0 : i32
    %c0_i32_0 = arith.constant 0 : i32
    %c0_i32_1 = arith.constant 0 : i32
    %c0_i32_2 = arith.constant 0 : i32
    return %arg0, %c0_i32, %c0_i32_0, %arg1, %c0_i32_1 : i32, i32, i32, i32, i32
  }
  func.func @transform_1(%arg0: i32, %arg1: i32) -> (i32, i32, i32) {
    %c0_i32 = arith.constant 0 : i32
    %c0_i32_0 = arith.constant 0 : i32
    %c0_i32_1 = arith.constant 0 : i32
    %c0_i32_2 = arith.constant 0 : i32
    return %c0_i32, %c0_i32_0, %c0_i32_1 : i32, i32, i32
  }
  func.func @transform_2(%arg0: i32, %arg1: i32) -> (i32, i32, i32) {
    %c0_i32 = arith.constant 0 : i32
    %c0_i32_0 = arith.constant 0 : i32
    %c0_i32_1 = arith.constant 0 : i32
    %c0_i32_2 = arith.constant 0 : i32
    return %c0_i32, %c0_i32_0, %c0_i32_1 : i32, i32, i32
  }
  func.func @transform_3(%arg0: i32, %arg1: i32) -> (i32, i32, i32) {
    %c0_i32 = arith.constant 0 : i32
    %c0_i32_0 = arith.constant 0 : i32
    %c0_i32_1 = arith.constant 0 : i32
    %c0_i32_2 = arith.constant 0 : i32
    return %c0_i32, %c0_i32_0, %c0_i32_1 : i32, i32, i32
  }
  func.func @transform_4(%arg0: i32, %arg1: i32) -> (i32, i32, i32, i32, i32) {
    %c0_i32 = arith.constant 0 : i32
    %c0_i32_0 = arith.constant 0 : i32
    %c0_i32_1 = arith.constant 0 : i32
    %c0_i32_2 = arith.constant 0 : i32
    return %arg0, %c0_i32, %arg1, %c0_i32_0, %c0_i32_1 : i32, i32, i32, i32, i32
  }
}

</mosaic_0001>

<bundles_post_ra>
// kernel: upcbr_forward.2
= control target key start
LH: loop header
LB: loop body
LE: loop exit
PB: predicated region body
PF: predicated region fallthrough
CT: control target
= control target key end

     0   :  { %s1912_s18 = smov 0   ;;  %s1914_s19 = smov 0   ;;  %s2099_s0 = inlined_call_operand.vmem [shape: f32[2,4,1152], index: 0, kind: input, shape index: {}, may-alias: {0,1}]   ;;  %s2100_s1 = inlined_call_operand.vmem [shape: f32[2,4,1152], index: 1, kind: input, shape index: {}, may-alias: {0,1}]   ;;  %s2101_s2 = inlined_call_operand.vmem [shape: f32[2,6,8,4], index: 2, kind: input, shape index: {}]   ;;  %s2102_s3 = inlined_call_operand.vmem [shape: f32[1,384], index: 3, kind: input, shape index: {}]   ;;  %s2103_s4 = inlined_call_operand.vmem [shape: f32[2,2,8,768], index: 4, kind: output, shape index: {0}]   ;;  %s2104_s5 = inlined_call_operand.vmem [shape: f32[2,2,2,8,2], index: 5, kind: output, shape index: {1}]  }
   0x1   :  { %s1916_s20 = smov 0   ;;  %s1918_s21 = smov 0  }
   0x2   :  { %s1920_s22 = smov 0   ;;  %s1922_s23 = smov 0  }
   0x3   :  { %s1924_s24 = smov 0  }
   0x4 LB: > { %s28_s25 = sadd.s32 1, %s1861_s21  ;;  %s31_s26 = sadd.s32 1, %s1865_s22  ;;  %s1873_s24 = sphi %s1924_s24, %s16_s24   ;;  %s1869_s23 = sphi %s1922_s23, %s2110_s23   ;;  %s1865_s22 = sphi %s1920_s22, %s2109_s22   ;;  %s1861_s21 = sphi %s1918_s21, %s2108_s21   ;;  %s1857_s20 = sphi %s1916_s20, %s2107_s20   ;;  %s1853_s19 = sphi %s1914_s19, %s2106_s19   ;;  %s1849_s18 = sphi %s1912_s18, %s2105_s18  }
   0x5   : > { %p29_p0 = scmp.ge.s32.totalorder %s28_s25, 2  ;;  %p1643_p1 = scmp.ge.s32.totalorder %s1873_s24, 1 }
   0x6   : > { %p255_p2 = scmp.lt.s32.totalorder %s1873_s24, 9  ;;  %s35_s27 = sadd.s32 1, %s1869_s23 }
   0x7   : > { %s2112_s25 = smov (%p29_p0, %s28_s25), 0  ;;  %s2114_s26 = smov (!%p29_p0, %s31_s26), %s1865_s22 }
   0x8   : > { %p256_p3 = pnand %p1643_p1, %p255_p2  ;;  %p33_p4 = scmp.ge.s32.totalorder %s2114_s26, 2 }
   0x9   : > { %s1959_s28 = smul.u32 (!%p256_p3), 3, %s1853_s19  ;;  %p323_p6 = scmp.lt.s32.totalorder (!%p256_p3), %s1857_s20, 1  ;;  %vm380_vm0 = vcmask (!%p256_p3), 404480   ;;  %v1876_v3 = vmov (!%p256_p3), 0.0   ;;  %vm1877_vm1 = vmmov (!%p256_p3), 0   ;;  %vm399_vm2 = vcmask (!%p256_p3), 1039360  }
   0xa   : > { %s2116_s26 = smov (%p33_p4, %s2114_s26), 0  ;;  %s2118_s27 = smov (!%p33_p4, %s35_s27), %s1869_s23 }
   0xb   : > { %p37_p5 = scmp.ge.s32.totalorder %s2118_s27, 2  ;;  %259 = sbr.rel (%p256_p3) target bundleno = 556 (0x22c), region = 36  ;;  %1700 = vmatprep.subr.mxu1 (!%p256_p3), %v1876_v3  ;;  %1702 = vmatprep.mubr.msk.f32.mxu1 (!%p256_p3), %vm1877_vm1, %v1876_v3  ;;  %vm407_vm3 = vcmask (!%p256_p3), 1043456   ;;  %vm403_vm4 = vcmask (!%p256_p3), 31744   ;;  %vm563_vm5 = vcmask (!%p256_p3), 1031168   ;;  %vm893_vm6 = vcmask (!%p256_p3), 637952  }
   0xc   : > { %s332_s29 = sadd.s32 (!%p256_p3), 1, %s1853_s19  ;;  %p325_p7 = scmp.lt.s32.totalorder (!%p256_p3), %s1959_s28, 8  ;;  %478 = vmatprep.mubr.f32.mxu0 (!%p256_p3), %v1876_v3  ;;  %vm1066_vm7 = vcmask (!%p256_p3), 646144   ;;  %vm1239_vm8 = vcmask (!%p256_p3), 654336   ;;  %v1398_v49 = vlaneseq (!%p256_p3)  ;;  %v1396_v52 = vld [vmem:[%s2102_s3] sm:$0x7] (!%p256_p3) }
   0xd   : > { %s2120_s27 = smov (%p37_p5, %s2118_s27), 0  ;;  %s333_s30 = smul.u32 (!%p256_p3), 3, %s332_s29  ;;  %vm1423_vm9 = vcmask (!%p256_p3), 7168   ;;  %vm1432_vm10 = vcmask (!%p256_p3), 15368  }
   0xe   : > { %s1875_s13 = smov (!%p256_p3), 127   ;;  %p344_p9 = scmp.lt.s32.totalorder (!%p256_p3), %s1849_s18, 1  ;;  %v1399_v50 = vshrl.u32 (!%p256_p3), %v1398_v49, 7 }
   0xf   : > { %p336_p8 = scmp.lt.s32.totalorder (!%p256_p3), %s333_s30, 8  ;;  %p354_p10 = scmp.lt.s32.totalorder (!%p256_p3), %s1959_s28, 5 }
  0x10   : > { %v1400_v51 = vsub.s32 (!%p256_p3), 0, %v1399_v50  ;;  %v1408_v53 = vsub.s32 (!%p256_p3), 2, %v1399_v50  ;;  %v1404_v54 = vsub.s32 (!%p256_p3), 1, %v1399_v50  ;;  %p367_p11 = scmp.lt.s32.totalorder (!%p256_p3), %s1853_s19, 1 }
  0x12   : > { %s2122_s20 = smov (!%p323_p6, %s1857_s20), 1  ;;  %s2124_s30 = smov (!%p336_p8, %s333_s30), 8  ;;  %v1401_v55 = vrot.slane %v1396_v52, %v1400_v51  ;;  %v1409_v56 = vrot.slane %v1396_v52, %v1408_v53  ;;  %v1405_v57 = vrot.slane %v1396_v52, %v1404_v54 }
  0x13   : > { %s1750_s6 = smul.u32 9, %s2122_s20  ;;  %s2126_s18 = smov (!%p344_p9, %s1849_s18), 1 }
  0x14   : > { %s326_s7 = scalar_select %p325_p7, %s1959_s28, 8 }
  0x15   : > { %s339_s14 = sadd.s32 %s1750_s6, %s2124_s30  ;;  %s1878_s30 = smov 126  }
  0x16   : > { %s328_s8 = sadd.s32 %s1750_s6, %s326_s7  ;;  %s1645_s15 = sshll.u32 %s339_s14, 2 }
  0x17   : > { %s1644_s9 = sshll.u32 %s328_s8, 2  ;;  %s341_s29 = scalar_lea.vmem %s2100_s1, %s1645_s15 }
  0x18   : > { %s330_s12 = scalar_lea.vmem %s2099_s0, %s1644_s9  ;;  %v379_v4 = vld [vmem:[%s341_s29] sm:$0xf]  ;;  %s1879_s6 = smov 78  }
  0x19   : > { %v1970_v0 = vld [vmem:[%s330_s12] sm:$0xff]  ;;  %v376_v1 = vld [vmem:[%s330_s12 + $0x8] sm:$0xf]  ;;  %381 = vst.msk [vmem:[#allocation2 + $0xc] sm:$0xf] %vm380_vm0, %v379_v4  ;;  %s1880_s7 = smov 79  }
  0x1a   : > { %378 = vst [vmem:[#allocation2 + $0x8] sm:$0xf] %v376_v1  ;;  %391 = vrot.lane.b32.xlu1 %v1970_v0, %s1875_s13  ;;  %v1975_v2 = vcombine.high %v1970_v0, %v1970_v0  ;;  %s1881_s8 = smov 80   ;;  %s1751_s9 = smul.u32 48, %s2126_s18 }
  0x1b   : > { %s2128_s28 = smov (!%p354_p10, %s1959_s28), 5  ;;  %s1753_s14 = smul.u32 12, %s2122_s20 }
  0x1c   : > { %393 = vrot.lane.b32.xlu0 %v1975_v2, %s1875_s13  ;;  %s2001_s12 = scalar_lea.vmem %s2101_s2, %s1751_s9  ;;  %s2130_s19 = smov (!%p367_p11, %s1853_s19), 1 }
  0x1d   : > { %v1651_v11 = vld [vmem:[%s2001_s12 + $0x8] sm:$0xff]  ;;  %v382_v20 = vld [vmem:[%s2001_s12] sm:$0xff]  ;;  %v1662_v28 = vld [vmem:[%s2001_s12 + $0x10] sm:$0xff]  ;;  %s1649_s10 = sshll.u32 %s2122_s20, 2 }
  0x1e   : > { %v1668_v36 = vld [vmem:[%s2001_s12 + $0x18] sm:$0xff]  ;;  %v1674_v44 = vld [vmem:[%s2001_s12 + $0x20] sm:$0xff]  ;;  %v1680_v48 = vld [vmem:[%s2001_s12 + $0x28] sm:$0xff] }
  0x21   : > { %v384_v5 = vld [vmem:[#allocation2 + $0x8] sm:$0xff] }
  0x22   : > { %v390_v6 = vcombine.high %v384_v5, %v384_v5  ;;  %395 = vrot.lane.b32.xlu0 %v384_v5, %s1875_s13  ;;  %v720_v23 = vld [vmem:[#allocation2 + $0x8] sm:$0xf] }
  0x24   : > { %397 = vrot.lane.b32.xlu1 %v390_v6, %s1875_s13  ;;  %s1752_s13 = smul.u32 6, %s2126_s18 }
  0x26   : > { %557 = vrot.lane.b32.xlu0 %v1975_v2, %s1878_s30  ;;  %s357_s15 = sadd.s32 %s1752_s13, %s2128_s28  ;;  %s1648_s28 = sshll.u32 %s2126_s18, 1 }
  0x27   : > { %s359_s16 = sadd.s32 %s1753_s14, %s357_s15  ;;  %s370_s9 = sadd.s32 %s1648_s28, %s2130_s19 }
  0x28   : > { %559 = vrot.lane.b32.xlu1 %v384_v5, %s1878_s30  ;;  %s372_s11 = sadd.s32 %s1649_s10, %s370_s9 }
  0x29   : > { %s1650_s12 = sshll.u32 %s372_s11, 3 }
  0x2a   : > { %555 = vrot.lane.b32.xlu0 %v1970_v0, %s1878_s30  ;;  %s374_s15 = scalar_lea.vmem %s2104_s5, %s1650_s12 }
  0x2c   : > { %561 = vrot.lane.b32.xlu1 %v390_v6, %s1878_s30  ;;  %s1647_s30 = sshll.u32 %s359_s16, 3 }
  0x2e   : > { %887 = vrot.lane.b32.xlu0 %v1975_v2, %s1879_s6 }
  0x30   : > { %889 = vrot.lane.b32.xlu1 %v384_v5, %s1879_s6 }
  0x32   : > { %885 = vrot.lane.b32.xlu0 %v1970_v0, %s1879_s6 }
  0x34   : > { %891 = vrot.lane.b32.xlu1 %v390_v6, %s1879_s6 }
  0x36   : > { %1060 = vrot.lane.b32.xlu0 %v1975_v2, %s1880_s7 }
  0x38   : > { %1062 = vrot.lane.b32.xlu1 %v384_v5, %s1880_s7 }
  0x3a   : > { %1058 = vrot.lane.b32.xlu0 %v1970_v0, %s1880_s7 }
  0x3c   : > { %1064 = vrot.lane.b32.xlu1 %v390_v6, %s1880_s7 }
  0x3e   : > { %1233 = vrot.lane.b32.xlu0 %v1975_v2, %s1881_s8 }
  0x40   : > { %1235 = vrot.lane.b32.xlu1 %v384_v5, %s1881_s8 }
  0x42   : > { %1231 = vrot.lane.b32.xlu0 %v1970_v0, %s1881_s8 }
  0x44   : > { %1237 = vrot.lane.b32.xlu1 %v390_v6, %s1881_s8  ;;  %s361_s8 = scalar_lea.vmem %s2103_s4, %s1647_s30 }
  0x8c   : > { %v392_v8 = vpop.permute.xlu1 %391 }
  0x8e   : > { %v394_v7 = vpop.permute.xlu0 %393 }
  0x8f   : > { %v400_v13 = vsel %vm399_vm2, %v392_v8, %v394_v7 }
  0x94   : > { %v396_v9 = vpop.permute.xlu0 %395 }
  0x95   : > { %v401_v10 = vsel %vm399_vm2, %v394_v7, %v396_v9 }
  0x96   : > { %v398_v12 = vpop.permute.xlu1 %397  ;;  %1652 = vmatprep.subr.msk.mxu0 %vm407_vm3, %v401_v10 }
  0x97   : > { %v402_v14 = vsel %vm399_vm2, %v396_v9, %v398_v12  ;;  %1653 = vmatpush1.msk.msra.mxu0 %vm407_vm3, %v400_v13 }
  0x98   : > { %1701 = vmatpush3.msk.msra.mxu1 %vm407_vm3, %v402_v14  ;;  %1654 = vmatmul.mubr.msk.f32.vlgmr.msra.gmra.mrb[0].mxu0 %vm403_vm4, %v1651_v11  ;;  %v558_v15 = vpop.permute.xlu0 %557 }
  0x99   : > { %1703 = vmatmul.mubr.msk.f32.vlgmr.msra.gmra.mrb[0].mxu1 %vm403_vm4, %v1651_v11  ;;  %1705 = vmatprep.subr.mxu1 %v1876_v3 }
  0x9a   : > { %v560_v16 = vpop.permute.xlu1 %559  ;;  %1707 = vmatprep.mubr.msk.f32.mxu1 %vm1877_vm1, %v1876_v3  ;;  %640 = vmatprep.mubr.f32.mxu0 %v1876_v3 }
  0x9b   : > { %v565_v17 = vsel %vm563_vm5, %v558_v15, %v560_v16 }
  0x9c   : > { %1657 = vmatprep.subr.msk.mxu0 %vm407_vm3, %v565_v17  ;;  %v556_v18 = vpop.permute.xlu0 %555 }
  0x9d   : > { %v564_v19 = vsel %vm563_vm5, %v556_v18, %v558_v15 }
  0x9e   : > { %v562_v21 = vpop.permute.xlu1 %561  ;;  %1658 = vmatpush1.msk.msra.mxu0 %vm407_vm3, %v564_v19 }
  0x9f   : > { %v566_v22 = vsel %vm563_vm5, %v560_v16, %v562_v21  ;;  %1663 = vmatprep.subr.msk.mxu0 %vm407_vm3, %v1975_v2 }
  0xa0   : > { %1706 = vmatpush3.msk.msra.mxu1 %vm407_vm3, %v566_v22  ;;  %1659 = vmatmul.mubr.msk.f32.vlgmr.msra.gmra.mrb[0].mxu0 %vm403_vm4, %v382_v20  ;;  %v888_v24 = vpop.permute.xlu0 %887 }
  0xa1   : > { %1708 = vmatmul.mubr.msk.f32.vlgmr.msra.gmra.mrb[0].mxu1 %vm403_vm4, %v382_v20  ;;  %1710 = vmatprep.subr.mxu1 %v1876_v3 }
  0xa2   : > { %1664 = vmatpush1.msk.msra.mxu0 %vm407_vm3, %v1970_v0  ;;  %1711 = vmatpush3.msk.msra.mxu1 %vm407_vm3, %v720_v23  ;;  %v890_v25 = vpop.permute.xlu1 %889 }
  0xa3   : > { %1712 = vmatprep.mubr.msk.f32.mxu1 %vm1877_vm1, %v1876_v3  ;;  %v895_v26 = vsel %vm893_vm6, %v888_v24, %v890_v25  ;;  %797 = vmatprep.mubr.f32.mxu0 %v1876_v3 }
  0xa4   : > { %v886_v27 = vpop.permute.xlu0 %885  ;;  %1669 = vmatprep.subr.msk.mxu0 %vm407_vm3, %v895_v26  ;;  %1715 = vmatprep.subr.mxu1 %v1876_v3 }
  0xa5   : > { %v894_v29 = vsel %vm893_vm6, %v886_v27, %v888_v24 }
  0xa6   : > { %v892_v30 = vpop.permute.xlu1 %891 }
  0xa7   : > { %v896_v31 = vsel %vm893_vm6, %v890_v25, %v892_v30 }
  0xa8   : > { %1665 = vmatmul.mubr.msk.f32.vlgmr.msra.gmra.mrb[0].mxu0 %vm403_vm4, %v1662_v28  ;;  %v1061_v32 = vpop.permute.xlu0 %1060 }
  0xa9   : > { %1713 = vmatmul.mubr.msk.f32.vlgmr.msra.gmra.mrb[0].mxu1 %vm403_vm4, %v1662_v28  ;;  %1670 = vmatpush1.msk.msra.mxu0 %vm407_vm3, %v894_v29 }
  0xaa   : > { %1716 = vmatpush3.msk.msra.mxu1 %vm407_vm3, %v896_v31  ;;  %1717 = vmatprep.mubr.msk.f32.mxu1 %vm1877_vm1, %v1876_v3  ;;  %v1063_v33 = vpop.permute.xlu1 %1062 }
  0xab   : > { %v1068_v34 = vsel %vm1066_vm7, %v1061_v32, %v1063_v33  ;;  %970 = vmatprep.mubr.f32.mxu0 %v1876_v3  ;;  %1720 = vmatprep.subr.mxu1 %v1876_v3 }
  0xac   : > { %v1059_v35 = vpop.permute.xlu0 %1058  ;;  %1675 = vmatprep.subr.msk.mxu0 %vm407_vm3, %v1068_v34 }
  0xad   : > { %v1067_v37 = vsel %vm1066_vm7, %v1059_v35, %v1061_v32 }
  0xae   : > { %v1065_v38 = vpop.permute.xlu1 %1064 }
  0xaf   : > { %v1069_v39 = vsel %vm1066_vm7, %v1063_v33, %v1065_v38 }
  0xb0   : > { %1671 = vmatmul.mubr.msk.f32.vlgmr.msra.gmra.mrb[0].mxu0 %vm403_vm4, %v1668_v36  ;;  %v1234_v40 = vpop.permute.xlu0 %1233 }
  0xb1   : > { %1718 = vmatmul.mubr.msk.f32.vlgmr.msra.gmra.mrb[0].mxu1 %vm403_vm4, %v1668_v36  ;;  %1676 = vmatpush1.msk.msra.mxu0 %vm407_vm3, %v1067_v37 }
  0xb2   : > { %1721 = vmatpush3.msk.msra.mxu1 %vm407_vm3, %v1069_v39  ;;  %1722 = vmatprep.mubr.msk.f32.mxu1 %vm1877_vm1, %v1876_v3  ;;  %v1236_v41 = vpop.permute.xlu1 %1235 }
  0xb3   : > { %v1241_v42 = vsel %vm1239_vm8, %v1234_v40, %v1236_v41  ;;  %1143 = vmatprep.mubr.f32.mxu0 %v1876_v3  ;;  %1725 = vmatprep.subr.mxu1 %v1876_v3 }
  0xb4   : > { %v1232_v43 = vpop.permute.xlu0 %1231  ;;  %1681 = vmatprep.subr.msk.mxu0 %vm407_vm3, %v1241_v42 }
  0xb5   : > { %v1240_v45 = vsel %vm1239_vm8, %v1232_v43, %v1234_v40 }
  0xb6   : > { %v1238_v46 = vpop.permute.xlu1 %1237 }
  0xb7   : > { %v1242_v47 = vsel %vm1239_vm8, %v1236_v41, %v1238_v46 }
  0xb8   : > { %1677 = vmatmul.mubr.msk.f32.vlgmr.msra.gmra.mrb[0].mxu0 %vm403_vm4, %v1674_v44 }
  0xb9   : > { %1723 = vmatmul.mubr.msk.f32.vlgmr.msra.gmra.mrb[0].mxu1 %vm403_vm4, %v1674_v44  ;;  %1682 = vmatpush1.msk.msra.mxu0 %vm407_vm3, %v1240_v45 }
  0xba   : > { %1726 = vmatpush3.msk.msra.mxu1 %vm407_vm3, %v1242_v47  ;;  %1727 = vmatprep.mubr.msk.f32.mxu1 %vm1877_vm1, %v1876_v3 }
  0xbb   : > { %1316 = vmatprep.mubr.f32.mxu0 %v1876_v3 }
  0xc0   : > { %1683 = vmatmul.mubr.msk.f32.vlgmr.msra.gmra.mrb[0].mxu0 %vm403_vm4, %v1680_v48 }
  0xc1   : > { %1728 = vmatmul.mubr.msk.f32.vlgmr.msra.gmra.mrb[0].mxu1 %vm403_vm4, %v1680_v48 }
 0x193   : > { %v1318_v58 = vpop.f32.mrb[0].mxu0 }
 0x194   : > { %v1389_v59 = vpop.f32.mrb[0].mxu1  ;;  %v1413_v60 = vmul.f32 %v1401_v55, %v1318_v58  ;;  %v1320_v61 = vpop.f32.mrb[1].mxu0 }
 0x195   : > { %v1415_v62 = vmul.f32 %v1409_v56, %v1389_v59  ;;  %v1729_v63 = vpop.f32.mrb[1].mxu1  ;;  %v1414_v0 = vmul.f32 %v1405_v57, %v1320_v61 }
 0x196   : > { %1416 = vst [vmem:[%s361_s8] sm:$0xff] %v1413_v60  ;;  %v1425_v1 = vmul.f32 %v1413_v60, %v1413_v60 }
 0x197   : > { %1418 = vst [vmem:[%s361_s8 + $0x10] sm:$0xff] %v1415_v62  ;;  %1417 = vst [vmem:[%s361_s8 + $0x8] sm:$0xff] %v1414_v0  ;;  %v1426_v2 = vmul.f32 %v1414_v0, %v1414_v0  ;;  %v1419_v3 = vadd.f32 %v1414_v0, %v1413_v60  ;;  %v1427_v5 = vmul.f32 %v1415_v62, %v1415_v62 }
 0x199   : > { %v1420_v4 = vadd.f32 %v1419_v3, %v1415_v62  ;;  %v1428_v6 = vadd.f32 %v1426_v2, %v1425_v1 }
 0x19b   : > { %1421 = vadd.xlane.f32.xlu0 %v1420_v4  ;;  %v1429_v7 = vadd.f32 %v1428_v6, %v1427_v5 }
 0x19d   : > { %1430 = vadd.xlane.f32.xlu1 %v1429_v7 }
 0x228   : > { %v1422_v8 = vpop.xlane.xlu0 %1421 }
 0x229   : > { %1424 = vst.msk [vmem:[%s374_s15] sm:$0xff] %vm1423_vm9, %v1422_v8 }
 0x22a   : > { %v1431_v9 = vpop.xlane.xlu1 %1430 }
 0x22b   : > { %1433 = vst.msk [vmem:[%s374_s15] sm:$0xff] %vm1432_vm10, %v1431_v9 }
 0x22c PF: > { %s16_s24 = sadd.s32 1, %s1873_s24   ;;  %s2105_s18 = smov %s1861_s21 }
 0x22d   : > { %p13_p12 = scmp.ge.s32.totalorder %s16_s24, 10   ;;  %s2106_s19 = smov %s1865_s22 }
 0x22e   : > { %s2107_s20 = smov %s1869_s23  ;;  %s2108_s21 = smov %s2112_s25 }
 0x22f   : > { %s2109_s22 = smov %s2116_s26  ;;  %s2110_s23 = smov %s2120_s27 }
 0x230   :  { %15 = sbr.rel (!%p13_p12) target bundleno = 4 (0x4), region = 89 }

// kernel: upcbr_forward.3
= control target key start
LH: loop header
LB: loop body
LE: loop exit
PB: predicated region body
PF: predicated region fallthrough
CT: control target
= control target key end

     0   :  { %9 = vsyncpa [#allocation4], 0  ;;  %s2754_s0 = inlined_call_operand.vmem [shape: f32[2,2,8,16,48], index: 0, kind: input, shape index: {}]   ;;  %s2755_s1 = inlined_call_operand.vmem [shape: f32[8,1,1], index: 1, kind: input, shape index: {}]   ;;  %s2756_s2 = inlined_call_operand.vmem [shape: f32[8,1,1], index: 2, kind: input, shape index: {}]   ;;  %s2757_s3 = inlined_call_operand.vmem [shape: f32[8,1,1], index: 3, kind: input, shape index: {}]   ;;  %s2758_s4 = inlined_call_operand.hbm [shape: f32[2,8,16,2,32], index: 4, kind: output, shape index: {}]  }
   0x1   :  { %11 = vsyncpa [#allocation4 + $0x1], 0  ;;  %s2070_s15 = smov 0   ;;  %s2072_s16 = smov 0  }
   0x2   :  { %s2074_s17 = smov 0   ;;  %s2076_s18 = smov 0  }
   0x3   :  { %s2078_s19 = smov 0   ;;  %s2080_s20 = smov 0  }
   0x4   :  { %s2082_s21 = smov 0   ;;  %s2084_s22 = smov 0  }
   0x5 LB: > { %s1832_s23 = sadd.s32 4294967295, %s2034_s22   ;;  %s1833_s24 = sadd.s32 4294967294, %s2034_s22   ;;  %s2034_s22 = sphi %s2084_s22, %s17_s22   ;;  %s2030_s21 = sphi %s2082_s21, %s2768_s21   ;;  %s2026_s20 = sphi %s2080_s20, %s2767_s20   ;;  %s2022_s19 = sphi %s2078_s19, %s2766_s19   ;;  %s2018_s18 = sphi %s2076_s18, %s2765_s18   ;;  %s2014_s17 = sphi %s2074_s17, %s2764_s17   ;;  %s2010_s16 = sphi %s2072_s16, %s2763_s16   ;;  %s2006_s15 = sphi %s2070_s15, %s2762_s15  }
   0x6   : > { %s26_s25 = sadd.s32 1, %s2026_s20  ;;  %s29_s26 = sadd.s32 1, %s2030_s21 }
   0x7   : > { %p27_p0 = scmp.ge.s32.totalorder %s26_s25, 2  ;;  %p45_p1 = scmp.ne.s32.totalorder %s2014_s17, %s2010_s16 }
   0x8   : > { %p46_p2 = scmp.eq.s32.totalorder %s2034_s22, 0  ;;  %p140_p5 = scmp.eq.s32.totalorder %s1832_s23, 3 }
   0x9   : > { %s2770_s25 = smov (%p27_p0, %s26_s25), 0  ;;  %s2772_s26 = smov (!%p27_p0, %s29_s26), %s2030_s21 }
   0xa   : > { %s34_s27 = ssub.s32 %s2026_s20, %s2770_s25  ;;  %p2122_p3 = por %p46_p2, %p45_p1 }
   0xb   : > { %p31_p4 = scmp.ge.s32.totalorder %s2772_s26, 2  ;;  %p145_p6 = scmp.ne.s32.totalorder %s2010_s16, %s2006_s15 }
   0xc   : > { %p146_p7 = scmp.eq.s32.totalorder %s1833_s24, 3  ;;  %p2130_p8 = por %p140_p5, %p45_p1 }
   0xd   : > { %s2774_s26 = smov (%p31_p4, %s2772_s26), 0  ;;  %s38_s7 = sadd.s32 1, %s2014_s17 }
   0xe   : > { %p2134_p9 = por %p146_p7, %p145_p6  ;;  %s33_s5 = ssub.s32 %s2030_s21, %s2774_s26 }
   0xf   : > { %s35_s6 = sor.u32 %s34_s27, %s33_s5  ;;  %p1835_p11 = scmp.ge.s32.totalorder %s2034_s22, 4 }
  0x10   : > { %p36_p10 = scmp.eq.s32.totalorder %s35_s6, 0 }
  0x11   : > { %171 = sbr.rel (%p1835_p11) target bundleno = 38 (0x26), region = 28 }
  0x12   : > { %s2142_s8 = scalar_select %p36_p10, %s2014_s17, %s38_s7  }
  0x18   : > { %174 = sbr.rel (!%p2122_p3) target bundleno = 38 (0x26), region = 32  ;;  %s176_s9 = sand.u32 (%p2122_p3), 1, %s2014_s17  }
  0x19   : > { %s1837_s10 = sshll.u32 (%p2122_p3), %s2030_s21, 5  ;;  %s1836_s11 = sshll.u32 (%p2122_p3), %s176_s9, 7 }
  0x1a   : > { %s180_s12 = sadd.s32 (%p2122_p3), %s2026_s20, %s1837_s10  ;;  %s178_s27 = scalar_lea.vmem (%p2122_p3), [#allocation2], %s1836_s11 }
  0x1b   : > { %s1838_s13 = sshll.u32 (%p2122_p3), %s180_s12, 3 }
  0x1c   : > { %s2153_s24 = scalar_lea.vmem (%p2122_p3), %s2754_s0, %s1838_s13 }
  0x1d   : > { %v240_v0 = vld [vmem:[%s2153_s24] sm:$0xff] (%p2122_p3)  ;;  %v242_v1 = vld [vmem:[%s2153_s24 + $0x10] sm:$0xff] (%p2122_p3) }
  0x1e   : > { %v244_v2 = vld [vmem:[%s2153_s24 + $0x20] sm:$0xff] (%p2122_p3)  ;;  %241 = vst [vmem:[%s178_s27] sm:$0xff] (%p2122_p3), %v240_v0  ;;  %243 = vst [vmem:[%s178_s27 + $0x8] sm:$0xff] (%p2122_p3), %v242_v1  ;;  %v246_v3 = vld [vmem:[%s2153_s24 + $0x30] sm:$0xff] (%p2122_p3) }
  0x1f   : > { %245 = vst [vmem:[%s178_s27 + $0x10] sm:$0xff] %v244_v2  ;;  %v248_v4 = vld [vmem:[%s2153_s24 + $0x40] sm:$0xff]  ;;  %v250_v5 = vld [vmem:[%s2153_s24 + $0x50] sm:$0xff]  ;;  %247 = vst [vmem:[%s178_s27 + $0x18] sm:$0xff] %v246_v3 }
  0x20   : > { %249 = vst [vmem:[%s178_s27 + $0x20] sm:$0xff] %v248_v4  ;;  %251 = vst [vmem:[%s178_s27 + $0x28] sm:$0xff] %v250_v5  ;;  %v252_v6 = vld [vmem:[%s2153_s24 + $0x60] sm:$0xff]  ;;  %v254_v7 = vld [vmem:[%s2153_s24 + $0x70] sm:$0xff] }
  0x21   : > { %v256_v8 = vld [vmem:[%s2153_s24 + $0x80] sm:$0xff]  ;;  %253 = vst [vmem:[%s178_s27 + $0x30] sm:$0xff] %v252_v6  ;;  %255 = vst [vmem:[%s178_s27 + $0x38] sm:$0xff] %v254_v7  ;;  %v258_v9 = vld [vmem:[%s2153_s24 + $0x90] sm:$0xff] }
  0x22   : > { %257 = vst [vmem:[%s178_s27 + $0x40] sm:$0xff] %v256_v8  ;;  %v260_v10 = vld [vmem:[%s2153_s24 + $0xa0] sm:$0xff]  ;;  %v262_v11 = vld [vmem:[%s2153_s24 + $0xb0] sm:$0xff]  ;;  %259 = vst [vmem:[%s178_s27 + $0x48] sm:$0xff] %v258_v9 }
  0x23   : > { %261 = vst [vmem:[%s178_s27 + $0x50] sm:$0xff] %v260_v10  ;;  %263 = vst [vmem:[%s178_s27 + $0x58] sm:$0xff] %v262_v11  ;;  %v264_v12 = vld [vmem:[%s2153_s24 + $0xc0] sm:$0xff]  ;;  %v266_v13 = vld [vmem:[%s2153_s24 + $0xd0] sm:$0xff] }
  0x24   : > { %v268_v14 = vld [vmem:[%s2153_s24 + $0xe0] sm:$0xff]  ;;  %265 = vst [vmem:[%s178_s27 + $0x60] sm:$0xff] %v264_v12  ;;  %267 = vst [vmem:[%s178_s27 + $0x68] sm:$0xff] %v266_v13  ;;  %v270_v15 = vld [vmem:[%s2153_s24 + $0xf0] sm:$0xff] }
  0x25   : > { %269 = vst [vmem:[%s178_s27 + $0x70] sm:$0xff] %v268_v14  ;;  %271 = vst [vmem:[%s178_s27 + $0x78] sm:$0xff] %v270_v15 }
  0x26 PF: > { %p1839_p12 = scmp.ge.s32.totalorder %s2034_s22, 1  ;;  %p276_p13 = scmp.lt.s32.totalorder %s2034_s22, 5 }
  0x28   : > { %p277_p0 = pnand %p1839_p12, %p276_p13 }
  0x29   : > { %v1844_v16 = vld [vmem:[%s2755_s1 + $0x2] ss:$0 sm:$0xff] (!%p277_p0)  ;;  %v1842_v17 = vld [vmem:[%s2755_s1] ss:$0 sm:$0xff] (!%p277_p0)  ;;  %v2036_v18 = vmov (!%p277_p0), 0   ;;  %s283_s27 = sand.u32 (!%p277_p0), 1, %s2010_s16   ;;  %v609_v53 = vlaneseq (!%p277_p0) }
  0x2a   : > { %280 = sbr.rel (%p277_p0) target bundleno = 293 (0x125), region = 70  ;;  %1967 = vset.pattern.permute.xlu1 (!%p277_p0), %v2036_v18  ;;  %1966 = vset.pattern.permute.xlu0 (!%p277_p0), %v2036_v18  ;;  %v1845_v19 = vld [vmem:[%s2755_s1 + $0x3] ss:$0 sm:$0xff] (!%p277_p0)  ;;  %v1843_v20 = vld [vmem:[%s2755_s1 + $0x1] ss:$0 sm:$0xff] (!%p277_p0)  ;;  %s2248_s28 = sshll.u32 (!%p277_p0), %s283_s27, 7 }
  0x2b   : > { %390 = vperm.xlu1 (!%p277_p0), %1967, %v1844_v16   ;;  %382 = vperm.xlu0 (!%p277_p0), %1966, %v1842_v17   ;;  %v1847_v21 = vld [vmem:[%s2755_s1 + $0x5] ss:$0 sm:$0xff] (!%p277_p0)  ;;  %v1846_v22 = vld [vmem:[%s2755_s1 + $0x4] ss:$0 sm:$0xff] (!%p277_p0)  ;;  %v1849_v23 = vld [vmem:[%s2755_s1 + $0x7] ss:$0 sm:$0xff] (!%p277_p0) }
  0x2c   : > { %v1848_v24 = vld [vmem:[%s2755_s1 + $0x6] ss:$0 sm:$0xff] (!%p277_p0)  ;;  %v1851_v25 = vld [vmem:[%s2756_s2 + $0x1] ss:$0 sm:$0xff] (!%p277_p0)  ;;  %v1850_v26 = vld [vmem:[%s2756_s2] ss:$0 sm:$0xff] (!%p277_p0) }
  0x2d   : > { %v1853_v27 = vld [vmem:[%s2756_s2 + $0x3] ss:$0 sm:$0xff] (!%p277_p0)  ;;  %v1852_v28 = vld [vmem:[%s2756_s2 + $0x2] ss:$0 sm:$0xff] (!%p277_p0)  ;;  %v1855_v29 = vld [vmem:[%s2756_s2 + $0x5] ss:$0 sm:$0xff] (!%p277_p0) }
  0x2e   : > { %v1854_v30 = vld [vmem:[%s2756_s2 + $0x4] ss:$0 sm:$0xff] (!%p277_p0)  ;;  %v1857_v31 = vld [vmem:[%s2756_s2 + $0x7] ss:$0 sm:$0xff] (!%p277_p0)  ;;  %v1856_v32 = vld [vmem:[%s2756_s2 + $0x6] ss:$0 sm:$0xff] (!%p277_p0) }
  0x2f   : > { %394 = vperm.xlu1 (!%p277_p0), %1967, %v1845_v19   ;;  %386 = vperm.xlu0 (!%p277_p0), %1966, %v1843_v20   ;;  %v1859_v33 = vld [vmem:[%s2757_s3 + $0x1] ss:$0 sm:$0xff] (!%p277_p0)  ;;  %v1858_v34 = vld [vmem:[%s2757_s3] ss:$0 sm:$0xff] (!%p277_p0)  ;;  %v1861_v35 = vld [vmem:[%s2757_s3 + $0x3] ss:$0 sm:$0xff] (!%p277_p0) }
  0x30   : > { %v1860_v36 = vld [vmem:[%s2757_s3 + $0x2] ss:$0 sm:$0xff] (!%p277_p0)  ;;  %v1863_v37 = vld [vmem:[%s2757_s3 + $0x5] ss:$0 sm:$0xff] (!%p277_p0)  ;;  %v1862_v38 = vld [vmem:[%s2757_s3 + $0x4] ss:$0 sm:$0xff] (!%p277_p0) }
  0x31   : > { %v1865_v39 = vld [vmem:[%s2757_s3 + $0x7] ss:$0 sm:$0xff]  ;;  %v1864_v40 = vld [vmem:[%s2757_s3 + $0x6] ss:$0 sm:$0xff]  ;;  %v2037_v51 = vmov 1966171168  }
  0x32   : > { %v607_v52 = vunpack.c.l.s4 %v2037_v51  ;;  %s285_s5 = scalar_lea.vmem [#allocation2], %s2248_s28  ;;  %v610_v61 = vshrl.u32 %v609_v53, 7  ;;  %vm1061_vm0 = vcmask 253952   ;;  %s2296_s6 = scalar_lea.vmem [#allocation3], %s2248_s28 }
  0x33   : > { %402 = vperm.xlu1 %1967, %v1847_v21   ;;  %398 = vperm.xlu0 %1966, %v1846_v22   ;;  %v333_v54 = vld [vmem:[%s285_s5] sm:$0xff]  ;;  %v334_v58 = vld [vmem:[%s285_s5 + $0x8] sm:$0xff]  ;;  %v335_v62 = vld [vmem:[%s285_s5 + $0x10] sm:$0xff]  ;;  %s1704_s7 = scalar_lea.sflag [#allocation4], %s283_s27 }
  0x34   : > { %v1866_v57 = vld [vmem:[%s285_s5 + $0x40] sm:$0xff]  ;;  %v1867_v59 = vld [vmem:[%s285_s5 + $0x48] sm:$0xff]  ;;  %v608_v60 = vunpack.c.0.s8 %v607_v52  ;;  %v1868_v63 = vld [vmem:[%s285_s5 + $0x50] sm:$0xff] }
  0x35   : > { %v336_v0 = vld [vmem:[%s285_s5 + $0x18] sm:$0xff]  ;;  %v338_v6 = vld [vmem:[%s285_s5 + $0x28] sm:$0xff]  ;;  %v337_v10 = vld [vmem:[%s285_s5 + $0x20] sm:$0xff] }
  0x36   : > { %v1869_v3 = vld [vmem:[%s285_s5 + $0x58] sm:$0xff]  ;;  %v1871_v7 = vld [vmem:[%s285_s5 + $0x68] sm:$0xff]  ;;  %v1870_v11 = vld [vmem:[%s285_s5 + $0x60] sm:$0xff]  ;;  %v2251_v13 = vsub.s32 %v608_v60, %v610_v61 }
  0x37   : > { %410 = vperm.xlu1 %1967, %v1849_v23   ;;  %406 = vperm.xlu0 %1966, %v1848_v24   ;;  %v340_v12 = vld [vmem:[%s285_s5 + $0x38] sm:$0xff]  ;;  %v339_v15 = vld [vmem:[%s285_s5 + $0x30] sm:$0xff] }
  0x38   : > { %v1873_v14 = vld [vmem:[%s285_s5 + $0x78] sm:$0xff]  ;;  %v1872_v16 = vld [vmem:[%s285_s5 + $0x70] sm:$0xff] }
  0x3b   : > { %466 = vperm.xlu1 %1967, %v1851_v25   ;;  %462 = vperm.xlu0 %1966, %v1850_v26  }
  0x3f   : > { %474 = vperm.xlu1 %1967, %v1853_v27   ;;  %470 = vperm.xlu0 %1966, %v1852_v28  }
  0x43   : > { %482 = vperm.xlu1 %1967, %v1855_v29   ;;  %478 = vperm.xlu0 %1966, %v1854_v30  }
  0x47   : > { %490 = vperm.xlu1 %1967, %v1857_v31   ;;  %486 = vperm.xlu0 %1966, %v1856_v32  }
  0x4b   : > { %554 = vperm.xlu1 %1967, %v1859_v33   ;;  %550 = vperm.xlu0 %1966, %v1858_v34  }
  0x4f   : > { %562 = vperm.xlu1 %1967, %v1861_v35   ;;  %558 = vperm.xlu0 %1966, %v1860_v36  }
  0x53   : > { %570 = vperm.xlu1 %1967, %v1863_v37   ;;  %566 = vperm.xlu0 %1966, %v1862_v38  }
  0x57   : > { %578 = vperm.xlu1 %1967, %v1865_v39   ;;  %574 = vperm.xlu0 %1966, %v1864_v40  }
  0xaa   : > { %v391_v41 = vpop.permute.xlu1 %390  ;;  %v383_v42 = vpop.permute.xlu0 %382 }
  0xab   : > { %v413_v1 = vmul.f32 %v383_v42, %v333_v54  ;;  %v1135_v2 = vmul.f32 %v1866_v57, %v383_v42  ;;  %v415_v21 = vmul.f32 %v391_v41, %v335_v62  ;;  %v1137_v22 = vmul.f32 %v1868_v63, %v391_v41 }
  0xae   : > { %v395_v43 = vpop.permute.xlu1 %394  ;;  %v387_v44 = vpop.permute.xlu0 %386 }
  0xaf   : > { %v414_v4 = vmul.f32 %v387_v44, %v334_v58  ;;  %v1136_v5 = vmul.f32 %v1867_v59, %v387_v44  ;;  %v416_v23 = vmul.f32 %v395_v43, %v336_v0  ;;  %v1138_v24 = vmul.f32 %v1869_v3, %v395_v43 }
  0xb2   : > { %v403_v45 = vpop.permute.xlu1 %402  ;;  %v399_v46 = vpop.permute.xlu0 %398 }
  0xb3   : > { %v418_v25 = vmul.f32 %v403_v45, %v338_v6  ;;  %v1140_v26 = vmul.f32 %v1871_v7, %v403_v45  ;;  %v417_v27 = vmul.f32 %v399_v46, %v337_v10  ;;  %v1139_v28 = vmul.f32 %v1870_v11, %v399_v46 }
  0xb6   : > { %v411_v47 = vpop.permute.xlu1 %410  ;;  %v407_v48 = vpop.permute.xlu0 %406 }
  0xb7   : > { %v420_v31 = vmul.f32 %v411_v47, %v340_v12  ;;  %v1142_v32 = vmul.f32 %v1873_v14, %v411_v47  ;;  %v419_v33 = vmul.f32 %v407_v48, %v339_v15  ;;  %v1141_v34 = vmul.f32 %v1872_v16, %v407_v48 }
  0xba   : > { %v467_v49 = vpop.permute.xlu1 %466  ;;  %v463_v50 = vpop.permute.xlu0 %462 }
  0xbb   : > { %v494_v17 = vadd.f32 %v467_v49, %v414_v4  ;;  %v1144_v18 = vadd.f32 %v1136_v5, %v467_v49  ;;  %v493_v19 = vadd.f32 %v463_v50, %v413_v1  ;;  %v1143_v20 = vadd.f32 %v1135_v2, %v463_v50 }
  0xbd   : > { %vm502_vm1 = vcmp.gt.f32.partialorder %v494_v17, 0.0  ;;  %vm1152_vm2 = vcmp.gt.f32.partialorder %v1144_v18, 0.0  ;;  %vm501_vm3 = vcmp.gt.f32.partialorder %v493_v19, 0.0  ;;  %vm1151_vm4 = vcmp.gt.f32.partialorder %v1143_v20, 0.0 }
  0xbe   : > { %v475_v55 = vpop.permute.xlu1 %474  ;;  %v471_v56 = vpop.permute.xlu0 %470 }
  0xbf   : > { %v2253_v35 = vadd.f32 %v475_v55, %v416_v23  ;;  %v2255_v36 = vadd.f32 %v1138_v24, %v475_v55  ;;  %v2257_v37 = vadd.f32 %v471_v56, %v415_v21  ;;  %v2259_v38 = vadd.f32 %v1137_v22, %v471_v56 }
  0xc1   : > { %vm504_vm5 = vcmp.gt.f32.partialorder %v2253_v35, 0.0  ;;  %vm1154_vm6 = vcmp.gt.f32.partialorder %v2255_v36, 0.0  ;;  %vm503_vm7 = vcmp.gt.f32.partialorder %v2257_v37, 0.0  ;;  %vm1153_vm8 = vcmp.gt.f32.partialorder %v2259_v38, 0.0 }
  0xc2   : > { %v483_v8 = vpop.permute.xlu1 %482  ;;  %v479_v9 = vpop.permute.xlu0 %478 }
  0xc3   : > { %v2261_v39 = vadd.f32 %v483_v8, %v418_v25  ;;  %v2263_v40 = vadd.f32 %v1140_v26, %v483_v8  ;;  %v2265_v41 = vadd.f32 %v479_v9, %v417_v27  ;;  %v2267_v42 = vadd.f32 %v1139_v28, %v479_v9 }
  0xc5   : > { %vm506_vm9 = vcmp.gt.f32.partialorder %v2261_v39, 0.0  ;;  %vm1156_vm10 = vcmp.gt.f32.partialorder %v2263_v40, 0.0  ;;  %vm505_vm11 = vcmp.gt.f32.partialorder %v2265_v41, 0.0  ;;  %vm1155_vm12 = vcmp.gt.f32.partialorder %v2267_v42, 0.0 }
  0xc6   : > { %v491_v29 = vpop.permute.xlu1 %490  ;;  %v487_v30 = vpop.permute.xlu0 %486 }
  0xc7   : > { %v2269_v49 = vadd.f32 %v491_v29, %v420_v31  ;;  %v2271_v50 = vadd.f32 %v1142_v32, %v491_v29  ;;  %v2273_v51 = vadd.f32 %v487_v30, %v419_v33  ;;  %v2275_v52 = vadd.f32 %v1141_v34, %v487_v30 }
  0xc9   : > { %vm508_vm13 = vcmp.gt.f32.partialorder %v2269_v49, 0.0  ;;  %vm1158_vm14 = vcmp.gt.f32.partialorder %v2271_v50, 0.0  ;;  %vm507_vm15 = vcmp.gt.f32.partialorder %v2273_v51, 0.0 }
  0xca   : > { %v555_v43 = vpop.permute.xlu1 %554  ;;  %v551_v44 = vpop.permute.xlu0 %550 }
  0xcb   : > { %v582_v45 = vmul.f32 %v555_v43, %v494_v17  ;;  %v1160_v46 = vmul.f32 %v1144_v18, %v555_v43  ;;  %v581_v47 = vmul.f32 %v551_v44, %v493_v19  ;;  %v1159_v48 = vmul.f32 %v1143_v20, %v551_v44 }
  0xcd   : > { %v590_v53 = vsel %vm502_vm1, %v494_v17, %v582_v45  ;;  %v1168_v54 = vsel %vm1152_vm2, %v1144_v18, %v1160_v46  ;;  %v589_v55 = vsel %vm501_vm3, %v493_v19, %v581_v47  ;;  %v1167_v56 = vsel %vm1151_vm4, %v1143_v20, %v1159_v48 }
  0xce   : > { %v654_v57 = vcombine.high %v590_v53, %v590_v53  ;;  %v661_v58 = vrot.slane %v590_v53, %v2251_v13  ;;  %v1232_v59 = vcombine.high %v1168_v54, %v1168_v54  ;;  %v1239_v60 = vrot.slane %v1168_v54, %v2251_v13  ;;  %v563_v30 = vpop.permute.xlu1 %562  ;;  %v559_v43 = vpop.permute.xlu0 %558 }
  0xcf   : > { %v605_v61 = vcombine.high %v589_v55, %v589_v55  ;;  %v612_v62 = vrot.slane %v589_v55, %v2251_v13  ;;  %v1183_v63 = vcombine.high %v1167_v56, %v1167_v56  ;;  %v2285_v0 = vrot.slane %v1167_v56, %v2251_v13 }
  0xd0   : > { %v668_v1 = vrot.slane %v654_v57, %v2251_v13  ;;  %v669_v2 = vcombine.high %v661_v58, %v661_v58  ;;  %v677_v3 = vrot.slane %v661_v58, %v2251_v13  ;;  %v1246_v4 = vrot.slane %v1232_v59, %v2251_v13 }
  0xd1   : > { %v1247_v5 = vcombine.high %v1239_v60, %v1239_v60  ;;  %v1255_v6 = vrot.slane %v1239_v60, %v2251_v13  ;;  %v619_v7 = vrot.slane %v605_v61, %v2251_v13  ;;  %v620_v8 = vcombine.high %v612_v62, %v612_v62 }
  0xd2   : > { %v670_v9 = vcombine.high %v668_v1, %v668_v1  ;;  %v684_v10 = vrot.slane %v668_v1, %v2251_v13  ;;  %v691_v11 = vrot.slane %v669_v2, %v2251_v13  ;;  %v699_v12 = vcombine.high %v677_v3, %v677_v3  ;;  %1070 = vst.msk [vmem:[%s2296_s6 + $0x10] sm:$0x1] %vm1061_vm0, %v677_v3 }
  0xd3   : > { %v1248_v14 = vcombine.high %v1246_v4, %v1246_v4  ;;  %v1262_v15 = vrot.slane %v1246_v4, %v2251_v13  ;;  %v1269_v16 = vrot.slane %v1247_v5, %v2251_v13  ;;  %v1277_v17 = vcombine.high %v1255_v6, %v1255_v6  ;;  %1647 = vst.msk [vmem:[%s2296_s6 + $0x11] sm:$0x1] %vm1061_vm0, %v1255_v6 }
  0xd4   : > { %v698_v18 = vrot.slane %v670_v9, %v2251_v13  ;;  %v700_v19 = vcombine.high %v684_v10, %v684_v10  ;;  %v701_v20 = vcombine.high %v691_v11, %v691_v11  ;;  %1071 = vst.msk [vmem:[%s2296_s6 + $0x12] sm:$0x1] %vm1061_vm0, %v691_v11  ;;  %1072 = vst.msk [vmem:[%s2296_s6 + $0x14] sm:$0x1] %vm1061_vm0, %v699_v12  ;;  %vm1157_vm1 = vcmp.gt.f32.partialorder %v2275_v52, 0.0 }
  0xd5   : > { %1074 = vst.msk [vmem:[%s2296_s6 + $0x18] sm:$0x1] %vm1061_vm0, %v684_v10  ;;  %v621_v21 = vcombine.high %v619_v7, %v619_v7  ;;  %v1276_v22 = vrot.slane %v1248_v14, %v2251_v13  ;;  %v1278_v23 = vcombine.high %v1262_v15, %v1262_v15  ;;  %v1279_v24 = vcombine.high %v1269_v16, %v1269_v16 }
  0xd6   : > { %1648 = vst.msk [vmem:[%s2296_s6 + $0x13] sm:$0x1] %vm1061_vm0, %v1269_v16  ;;  %1649 = vst.msk [vmem:[%s2296_s6 + $0x15] sm:$0x1] %vm1061_vm0, %v1277_v17  ;;  %v628_v25 = vrot.slane %v612_v62, %v2251_v13  ;;  %v702_v26 = vcombine.high %v698_v18, %v698_v18  ;;  %v635_v27 = vrot.slane %v619_v7, %v2251_v13 }
  0xd7   : > { %1651 = vst.msk [vmem:[%s2296_s6 + $0x19] sm:$0x1] %vm1061_vm0, %v1262_v15  ;;  %1073 = vst.msk [vmem:[%s2296_s6 + $0x16] sm:$0x1] %vm1061_vm0, %v701_v20  ;;  %v642_v28 = vrot.slane %v620_v8, %v2251_v13  ;;  %v649_v29 = vrot.slane %v621_v21, %v2251_v13  ;;  %v1280_v31 = vcombine.high %v1276_v22, %v1276_v22 }
  0xd8   : > { %1075 = vst.msk [vmem:[%s2296_s6 + $0x1a] sm:$0x1] %vm1061_vm0, %v698_v18  ;;  %1076 = vst.msk [vmem:[%s2296_s6 + $0x1c] sm:$0x1] %vm1061_vm0, %v700_v19  ;;  %v650_v32 = vcombine.high %v628_v25, %v628_v25  ;;  %v1197_v33 = vrot.slane %v1183_v63, %v2251_v13  ;;  %v1198_v34 = vcombine.high %v2285_v0, %v2285_v0 }
  0xd9   : > { %1650 = vst.msk [vmem:[%s2296_s6 + $0x17] sm:$0x1] %vm1061_vm0, %v1279_v24  ;;  %1652 = vst.msk [vmem:[%s2296_s6 + $0x1b] sm:$0x1] %vm1061_vm0, %v1276_v22  ;;  %v651_v44 = vcombine.high %v635_v27, %v635_v27  ;;  %v652_v45 = vcombine.high %v642_v28, %v642_v28  ;;  %v653_v46 = vcombine.high %v649_v29, %v649_v29 }
  0xda   : > { %1653 = vst.msk [vmem:[%s2296_s6 + $0x1d] sm:$0x1] %vm1061_vm0, %v1278_v23  ;;  %1062 = vst.msk [vmem:[%s2296_s6] sm:$0x1] %vm1061_vm0, %v628_v25  ;;  %v1206_v47 = vrot.slane %v2285_v0, %v2251_v13  ;;  %v1199_v48 = vcombine.high %v1197_v33, %v1197_v33  ;;  %v1213_v53 = vrot.slane %v1197_v33, %v2251_v13 }
  0xdb   : > { %1077 = vst.msk [vmem:[%s2296_s6 + $0x1e] sm:$0x1] %vm1061_vm0, %v702_v26  ;;  %1063 = vst.msk [vmem:[%s2296_s6 + $0x2] sm:$0x1] %vm1061_vm0, %v642_v28  ;;  %v1220_v54 = vrot.slane %v1198_v34, %v2251_v13  ;;  %v584_v55 = vmul.f32 %v563_v30, %v2253_v35  ;;  %v1162_v57 = vmul.f32 %v2255_v36, %v563_v30  ;;  %v571_v26 = vpop.permute.xlu1 %570 }
  0xdc   : > { %1066 = vst.msk [vmem:[%s2296_s6 + $0x8] sm:$0x1] %vm1061_vm0, %v635_v27  ;;  %1067 = vst.msk [vmem:[%s2296_s6 + $0xa] sm:$0x1] %vm1061_vm0, %v649_v29  ;;  %v1228_v56 = vcombine.high %v1206_v47, %v1206_v47  ;;  %v583_v58 = vmul.f32 %v559_v43, %v2257_v37  ;;  %v2369_v59 = vmul.f32 %v2259_v38, %v559_v43 }
  0xdd   : > { %1654 = vst.msk [vmem:[%s2296_s6 + $0x1f] sm:$0x1] %vm1061_vm0, %v1280_v31  ;;  %1064 = vst.msk [vmem:[%s2296_s6 + $0x4] sm:$0x1] %vm1061_vm0, %v650_v32  ;;  %v1227_v60 = vrot.slane %v1199_v48, %v2251_v13  ;;  %v1229_v61 = vcombine.high %v1213_v53, %v1213_v53  ;;  %v1230_v62 = vcombine.high %v1220_v54, %v1220_v54 }
  0xde   : > { %1065 = vst.msk [vmem:[%s2296_s6 + $0x6] sm:$0x1] %vm1061_vm0, %v652_v45  ;;  %1068 = vst.msk [vmem:[%s2296_s6 + $0xc] sm:$0x1] %vm1061_vm0, %v651_v44  ;;  %v592_v63 = vsel %vm504_vm5, %v2253_v35, %v584_v55  ;;  %v1170_v2 = vsel %vm1154_vm6, %v2255_v36, %v1162_v57  ;;  %v591_v3 = vsel %vm503_vm7, %v2257_v37, %v583_v58 }
  0xdf   : > { %1069 = vst.msk [vmem:[%s2296_s6 + $0xe] sm:$0x1] %vm1061_vm0, %v653_v46  ;;  %1639 = vst.msk [vmem:[%s2296_s6 + $0x1] sm:$0x1] %vm1061_vm0, %v1206_v47  ;;  %v752_v0 = vcombine.high %v592_v63, %v592_v63  ;;  %v759_v1 = vrot.slane %v592_v63, %v2251_v13  ;;  %v1231_v4 = vcombine.high %v1227_v60, %v1227_v60  ;;  %v567_v47 = vpop.permute.xlu0 %566 }
  0xe0   : > { %1640 = vst.msk [vmem:[%s2296_s6 + $0x3] sm:$0x1] %vm1061_vm0, %v1220_v54  ;;  %1643 = vst.msk [vmem:[%s2296_s6 + $0x9] sm:$0x1] %vm1061_vm0, %v1213_v53  ;;  %v1330_v35 = vcombine.high %v1170_v2, %v1170_v2  ;;  %v1337_v5 = vrot.slane %v1170_v2, %v2251_v13  ;;  %v703_v6 = vcombine.high %v591_v3, %v591_v3 }
  0xe1   : > { %1641 = vst.msk [vmem:[%s2296_s6 + $0x5] sm:$0x1] %vm1061_vm0, %v1228_v56  ;;  %1642 = vst.msk [vmem:[%s2296_s6 + $0x7] sm:$0x1] %vm1061_vm0, %v1230_v62  ;;  %v766_v36 = vrot.slane %v752_v0, %v2251_v13  ;;  %v767_v7 = vcombine.high %v759_v1, %v759_v1  ;;  %v775_v8 = vrot.slane %v759_v1, %v2251_v13 }
  0xe2   : > { %1644 = vst.msk [vmem:[%s2296_s6 + $0xb] sm:$0x1] %vm1061_vm0, %v1227_v60  ;;  %1645 = vst.msk [vmem:[%s2296_s6 + $0xd] sm:$0x1] %vm1061_vm0, %v1229_v61  ;;  %v710_v37 = vrot.slane %v591_v3, %v2251_v13  ;;  %v1344_v9 = vrot.slane %v1330_v35, %v2251_v13  ;;  %v1345_v10 = vcombine.high %v1337_v5, %v1337_v5 }
  0xe3   : > { %1646 = vst.msk [vmem:[%s2296_s6 + $0xf] sm:$0x1] %vm1061_vm0, %v1231_v4  ;;  %v1353_v11 = vrot.slane %v1337_v5, %v2251_v13  ;;  %v717_v12 = vrot.slane %v703_v6, %v2251_v13  ;;  %v768_v14 = vcombine.high %v766_v36, %v766_v36  ;;  %v782_v15 = vrot.slane %v766_v36, %v2251_v13 }
  0xe4   : > { %v789_v16 = vrot.slane %v767_v7, %v2251_v13  ;;  %v797_v17 = vcombine.high %v775_v8, %v775_v8  ;;  %1086 = vst.msk [vmem:[%s2296_s6 + $0x30] sm:$0x1] %vm1061_vm0, %v775_v8  ;;  %v1346_v18 = vcombine.high %v1344_v9, %v1344_v9  ;;  %v1360_v19 = vrot.slane %v1344_v9, %v2251_v13 }
  0xe5   : > { %v1367_v20 = vrot.slane %v1345_v10, %v2251_v13  ;;  %v1375_v21 = vcombine.high %v1353_v11, %v1353_v11  ;;  %1663 = vst.msk [vmem:[%s2296_s6 + $0x31] sm:$0x1] %vm1061_vm0, %v1353_v11  ;;  %v796_v22 = vrot.slane %v768_v14, %v2251_v13  ;;  %v798_v23 = vcombine.high %v782_v15, %v782_v15 }
  0xe6   : > { %v799_v24 = vcombine.high %v789_v16, %v789_v16  ;;  %1087 = vst.msk [vmem:[%s2296_s6 + $0x32] sm:$0x1] %vm1061_vm0, %v789_v16  ;;  %1088 = vst.msk [vmem:[%s2296_s6 + $0x34] sm:$0x1] %vm1061_vm0, %v797_v17  ;;  %v718_v25 = vcombine.high %v710_v37, %v710_v37  ;;  %v1374_v27 = vrot.slane %v1346_v18, %v2251_v13 }
  0xe7   : > { %1090 = vst.msk [vmem:[%s2296_s6 + $0x38] sm:$0x1] %vm1061_vm0, %v782_v15  ;;  %v1376_v28 = vcombine.high %v1360_v19, %v1360_v19  ;;  %v1377_v29 = vcombine.high %v1367_v20, %v1367_v20  ;;  %1664 = vst.msk [vmem:[%s2296_s6 + $0x33] sm:$0x1] %vm1061_vm0, %v1367_v20  ;;  %v719_v30 = vcombine.high %v717_v12, %v717_v12 }
  0xe8   : > { %1665 = vst.msk [vmem:[%s2296_s6 + $0x35] sm:$0x1] %vm1061_vm0, %v1375_v21  ;;  %1667 = vst.msk [vmem:[%s2296_s6 + $0x39] sm:$0x1] %vm1061_vm0, %v1360_v19  ;;  %v800_v31 = vcombine.high %v796_v22, %v796_v22  ;;  %v726_v32 = vrot.slane %v710_v37, %v2251_v13  ;;  %v733_v33 = vrot.slane %v717_v12, %v2251_v13 }
  0xe9   : > { %1089 = vst.msk [vmem:[%s2296_s6 + $0x36] sm:$0x1] %vm1061_vm0, %v799_v24  ;;  %1091 = vst.msk [vmem:[%s2296_s6 + $0x3a] sm:$0x1] %vm1061_vm0, %v796_v22  ;;  %v740_v34 = vrot.slane %v718_v25, %v2251_v13  ;;  %v1378_v43 = vcombine.high %v1374_v27, %v1374_v27  ;;  %v747_v44 = vrot.slane %v719_v30, %v2251_v13 }
  0xea   : > { %1092 = vst.msk [vmem:[%s2296_s6 + $0x3c] sm:$0x1] %vm1061_vm0, %v798_v23  ;;  %1666 = vst.msk [vmem:[%s2296_s6 + $0x37] sm:$0x1] %vm1061_vm0, %v1377_v29  ;;  %v1169_v45 = vsel %vm1153_vm8, %v2259_v38, %v2369_v59  ;;  %v586_v46 = vmul.f32 %v571_v26, %v2261_v39  ;;  %v748_v48 = vcombine.high %v726_v32, %v726_v32 }
  0xeb   : > { %1668 = vst.msk [vmem:[%s2296_s6 + $0x3b] sm:$0x1] %vm1061_vm0, %v1374_v27  ;;  %1669 = vst.msk [vmem:[%s2296_s6 + $0x3d] sm:$0x1] %vm1061_vm0, %v1376_v28  ;;  %v749_v53 = vcombine.high %v733_v33, %v733_v33  ;;  %v750_v54 = vcombine.high %v740_v34, %v740_v34  ;;  %v1281_v38 = vcombine.high %v1169_v45, %v1169_v45 }
  0xec   : > { %1093 = vst.msk [vmem:[%s2296_s6 + $0x3e] sm:$0x1] %vm1061_vm0, %v800_v31  ;;  %1078 = vst.msk [vmem:[%s2296_s6 + $0x20] sm:$0x1] %vm1061_vm0, %v726_v32  ;;  %v751_v55 = vcombine.high %v747_v44, %v747_v44  ;;  %v1288_v56 = vrot.slane %v1169_v45, %v2251_v13  ;;  %v594_v57 = vsel %vm506_vm9, %v2261_v39, %v586_v46 }
  0xed   : > { %1079 = vst.msk [vmem:[%s2296_s6 + $0x22] sm:$0x1] %vm1061_vm0, %v740_v34  ;;  %1082 = vst.msk [vmem:[%s2296_s6 + $0x28] sm:$0x1] %vm1061_vm0, %v733_v33  ;;  %v1164_v58 = vmul.f32 %v2263_v40, %v571_v26  ;;  %v1295_v59 = vrot.slane %v1281_v38, %v2251_v13  ;;  %v850_v60 = vcombine.high %v594_v57, %v594_v57 }
  0xee   : > { %1670 = vst.msk [vmem:[%s2296_s6 + $0x3f] sm:$0x1] %vm1061_vm0, %v1378_v43  ;;  %1083 = vst.msk [vmem:[%s2296_s6 + $0x2a] sm:$0x1] %vm1061_vm0, %v747_v44  ;;  %v857_v61 = vrot.slane %v594_v57, %v2251_v13  ;;  %v585_v62 = vmul.f32 %v567_v47, %v2265_v41  ;;  %v1296_v39 = vcombine.high %v1288_v56, %v1288_v56 }
  0xef   : > { %1080 = vst.msk [vmem:[%s2296_s6 + $0x24] sm:$0x1] %vm1061_vm0, %v748_v48  ;;  %1081 = vst.msk [vmem:[%s2296_s6 + $0x26] sm:$0x1] %vm1061_vm0, %v750_v54  ;;  %v1304_v63 = vrot.slane %v1288_v56, %v2251_v13  ;;  %v1172_v0 = vsel %vm1156_vm10, %v2263_v40, %v1164_v58  ;;  %v1163_v1 = vmul.f32 %v2267_v42, %v567_v47 }
  0xf0   : > { %1084 = vst.msk [vmem:[%s2296_s6 + $0x2c] sm:$0x1] %vm1061_vm0, %v749_v53  ;;  %1085 = vst.msk [vmem:[%s2296_s6 + $0x2e] sm:$0x1] %vm1061_vm0, %v751_v55  ;;  %v1297_v2 = vcombine.high %v1295_v59, %v1295_v59  ;;  %v1311_v3 = vrot.slane %v1295_v59, %v2251_v13  ;;  %v864_v4 = vrot.slane %v850_v60, %v2251_v13  ;;  %v579_v53 = vpop.permute.xlu1 %578 }
  0xf1   : > { %v865_v35 = vcombine.high %v857_v61, %v857_v61  ;;  %v1318_v5 = vrot.slane %v1296_v39, %v2251_v13  ;;  %v1326_v6 = vcombine.high %v1304_v63, %v1304_v63  ;;  %1655 = vst.msk [vmem:[%s2296_s6 + $0x21] sm:$0x1] %vm1061_vm0, %v1304_v63  ;;  %v873_v36 = vrot.slane %v857_v61, %v2251_v13  ;;  %v575_v61 = vpop.permute.xlu0 %574 }
  0xf2   : > { %v1428_v40 = vcombine.high %v1172_v0, %v1172_v0  ;;  %v1325_v7 = vrot.slane %v1297_v2, %v2251_v13  ;;  %v1327_v8 = vcombine.high %v1311_v3, %v1311_v3  ;;  %1659 = vst.msk [vmem:[%s2296_s6 + $0x29] sm:$0x1] %vm1061_vm0, %v1311_v3  ;;  %v866_v37 = vcombine.high %v864_v4, %v864_v4 }
  0xf3   : > { %v880_v9 = vrot.slane %v864_v4, %v2251_v13  ;;  %v1328_v10 = vcombine.high %v1318_v5, %v1318_v5  ;;  %1656 = vst.msk [vmem:[%s2296_s6 + $0x23] sm:$0x1] %vm1061_vm0, %v1318_v5  ;;  %1657 = vst.msk [vmem:[%s2296_s6 + $0x25] sm:$0x1] %vm1061_vm0, %v1326_v6  ;;  %v887_v11 = vrot.slane %v865_v35, %v2251_v13 }
  0xf4   : > { %v895_v12 = vcombine.high %v873_v36, %v873_v36  ;;  %1102 = vst.msk [vmem:[%s2296_s6 + $0x50] sm:$0x1] %vm1061_vm0, %v873_v36  ;;  %v1435_v14 = vrot.slane %v1172_v0, %v2251_v13  ;;  %v1329_v15 = vcombine.high %v1325_v7, %v1325_v7  ;;  %1660 = vst.msk [vmem:[%s2296_s6 + $0x2b] sm:$0x1] %vm1061_vm0, %v1325_v7 }
  0xf5   : > { %1661 = vst.msk [vmem:[%s2296_s6 + $0x2d] sm:$0x1] %vm1061_vm0, %v1327_v8  ;;  %v894_v16 = vrot.slane %v866_v37, %v2251_v13  ;;  %v896_v17 = vcombine.high %v880_v9, %v880_v9  ;;  %1106 = vst.msk [vmem:[%s2296_s6 + $0x58] sm:$0x1] %vm1061_vm0, %v880_v9  ;;  %v1442_v18 = vrot.slane %v1428_v40, %v2251_v13 }
  0xf6   : > { %1658 = vst.msk [vmem:[%s2296_s6 + $0x27] sm:$0x1] %vm1061_vm0, %v1328_v10  ;;  %v897_v19 = vcombine.high %v887_v11, %v887_v11  ;;  %1103 = vst.msk [vmem:[%s2296_s6 + $0x52] sm:$0x1] %vm1061_vm0, %v887_v11  ;;  %v1443_v20 = vcombine.high %v1435_v14, %v1435_v14  ;;  %v1451_v21 = vrot.slane %v1435_v14, %v2251_v13 }
  0xf7   : > { %1104 = vst.msk [vmem:[%s2296_s6 + $0x54] sm:$0x1] %vm1061_vm0, %v895_v12  ;;  %v593_v22 = vsel %vm505_vm11, %v2265_v41, %v585_v62  ;;  %1662 = vst.msk [vmem:[%s2296_s6 + $0x2f] sm:$0x1] %vm1061_vm0, %v1329_v15  ;;  %v898_v23 = vcombine.high %v894_v16, %v894_v16  ;;  %v1444_v24 = vcombine.high %v1442_v18, %v1442_v18 }
  0xf8   : > { %1107 = vst.msk [vmem:[%s2296_s6 + $0x5a] sm:$0x1] %vm1061_vm0, %v894_v16  ;;  %1108 = vst.msk [vmem:[%s2296_s6 + $0x5c] sm:$0x1] %vm1061_vm0, %v896_v17  ;;  %v1458_v25 = vrot.slane %v1442_v18, %v2251_v13  ;;  %v801_v26 = vcombine.high %v593_v22, %v593_v22  ;;  %v1465_v41 = vrot.slane %v1443_v20, %v2251_v13 }
  0xf9   : > { %1105 = vst.msk [vmem:[%s2296_s6 + $0x56] sm:$0x1] %vm1061_vm0, %v897_v19  ;;  %v1473_v27 = vcombine.high %v1451_v21, %v1451_v21  ;;  %1679 = vst.msk [vmem:[%s2296_s6 + $0x51] sm:$0x1] %vm1061_vm0, %v1451_v21  ;;  %v808_v28 = vrot.slane %v593_v22, %v2251_v13  ;;  %v1171_v29 = vsel %vm1155_vm12, %v2267_v42, %v1163_v1 }
  0xfa   : > { %1109 = vst.msk [vmem:[%s2296_s6 + $0x5e] sm:$0x1] %vm1061_vm0, %v898_v23  ;;  %v1472_v30 = vrot.slane %v1444_v24, %v2251_v13  ;;  %v1474_v31 = vcombine.high %v1458_v25, %v1458_v25  ;;  %1683 = vst.msk [vmem:[%s2296_s6 + $0x59] sm:$0x1] %vm1061_vm0, %v1458_v25  ;;  %v815_v32 = vrot.slane %v801_v26, %v2251_v13 }
  0xfb   : > { %v1379_v33 = vcombine.high %v1171_v29, %v1171_v29  ;;  %v1475_v34 = vcombine.high %v1465_v41, %v1465_v41  ;;  %1680 = vst.msk [vmem:[%s2296_s6 + $0x53] sm:$0x1] %vm1061_vm0, %v1465_v41  ;;  %1681 = vst.msk [vmem:[%s2296_s6 + $0x55] sm:$0x1] %vm1061_vm0, %v1473_v27  ;;  %v816_v42 = vcombine.high %v808_v28, %v808_v28 }
  0xfc   : > { %v824_v43 = vrot.slane %v808_v28, %v2251_v13  ;;  %v1386_v44 = vrot.slane %v1171_v29, %v2251_v13  ;;  %v1476_v45 = vcombine.high %v1472_v30, %v1472_v30  ;;  %1684 = vst.msk [vmem:[%s2296_s6 + $0x5b] sm:$0x1] %vm1061_vm0, %v1472_v30  ;;  %1685 = vst.msk [vmem:[%s2296_s6 + $0x5d] sm:$0x1] %vm1061_vm0, %v1474_v31 }
  0xfd   : > { %v817_v46 = vcombine.high %v815_v32, %v815_v32  ;;  %v831_v47 = vrot.slane %v815_v32, %v2251_v13  ;;  %v1393_v48 = vrot.slane %v1379_v33, %v2251_v13  ;;  %1682 = vst.msk [vmem:[%s2296_s6 + $0x57] sm:$0x1] %vm1061_vm0, %v1475_v34  ;;  %v838_v54 = vrot.slane %v816_v42, %v2251_v13 }
  0xfe   : > { %v846_v38 = vcombine.high %v824_v43, %v824_v43  ;;  %1094 = vst.msk [vmem:[%s2296_s6 + $0x40] sm:$0x1] %vm1061_vm0, %v824_v43  ;;  %v1394_v55 = vcombine.high %v1386_v44, %v1386_v44  ;;  %v1402_v56 = vrot.slane %v1386_v44, %v2251_v13  ;;  %1686 = vst.msk [vmem:[%s2296_s6 + $0x5f] sm:$0x1] %vm1061_vm0, %v1476_v45 }
  0xff   : > { %v845_v57 = vrot.slane %v817_v46, %v2251_v13  ;;  %v847_v58 = vcombine.high %v831_v47, %v831_v47  ;;  %1098 = vst.msk [vmem:[%s2296_s6 + $0x48] sm:$0x1] %vm1061_vm0, %v831_v47  ;;  %v1395_v59 = vcombine.high %v1393_v48, %v1393_v48  ;;  %v1409_v60 = vrot.slane %v1393_v48, %v2251_v13 }
 0x100   : > { %v848_v62 = vcombine.high %v838_v54, %v838_v54  ;;  %1095 = vst.msk [vmem:[%s2296_s6 + $0x42] sm:$0x1] %vm1061_vm0, %v838_v54  ;;  %1096 = vst.msk [vmem:[%s2296_s6 + $0x44] sm:$0x1] %vm1061_vm0, %v846_v38  ;;  %v1416_v39 = vrot.slane %v1394_v55, %v2251_v13  ;;  %v1424_v63 = vcombine.high %v1402_v56, %v1402_v56 }
 0x101   : > { %1671 = vst.msk [vmem:[%s2296_s6 + $0x41] sm:$0x1] %vm1061_vm0, %v1402_v56  ;;  %v588_v0 = vmul.f32 %v579_v53, %v2269_v49  ;;  %v849_v1 = vcombine.high %v845_v57, %v845_v57  ;;  %1099 = vst.msk [vmem:[%s2296_s6 + $0x4a] sm:$0x1] %vm1061_vm0, %v845_v57  ;;  %v1423_v2 = vrot.slane %v1395_v59, %v2251_v13 }
 0x102   : > { %1100 = vst.msk [vmem:[%s2296_s6 + $0x4c] sm:$0x1] %vm1061_vm0, %v847_v58  ;;  %v1425_v3 = vcombine.high %v1409_v60, %v1409_v60  ;;  %1675 = vst.msk [vmem:[%s2296_s6 + $0x49] sm:$0x1] %vm1061_vm0, %v1409_v60  ;;  %v1166_v4 = vmul.f32 %v2271_v50, %v579_v53  ;;  %v1426_v35 = vcombine.high %v1416_v39, %v1416_v39 }
 0x103   : > { %1097 = vst.msk [vmem:[%s2296_s6 + $0x46] sm:$0x1] %vm1061_vm0, %v848_v62  ;;  %1672 = vst.msk [vmem:[%s2296_s6 + $0x43] sm:$0x1] %vm1061_vm0, %v1416_v39  ;;  %v596_v5 = vsel %vm508_vm13, %v2269_v49, %v588_v0  ;;  %v587_v6 = vmul.f32 %v575_v61, %v2273_v51  ;;  %v1165_v36 = vmul.f32 %v2275_v52, %v575_v61 }
 0x104   : > { %1673 = vst.msk [vmem:[%s2296_s6 + $0x45] sm:$0x1] %vm1061_vm0, %v1424_v63  ;;  %1101 = vst.msk [vmem:[%s2296_s6 + $0x4e] sm:$0x1] %vm1061_vm0, %v849_v1  ;;  %v1427_v40 = vcombine.high %v1423_v2, %v1423_v2  ;;  %v948_v7 = vcombine.high %v596_v5, %v596_v5  ;;  %v955_v8 = vrot.slane %v596_v5, %v2251_v13 }
 0x105   : > { %1676 = vst.msk [vmem:[%s2296_s6 + $0x4b] sm:$0x1] %vm1061_vm0, %v1423_v2  ;;  %1677 = vst.msk [vmem:[%s2296_s6 + $0x4d] sm:$0x1] %vm1061_vm0, %v1425_v3  ;;  %v1174_v37 = vsel %vm1158_vm14, %v2271_v50, %v1166_v4  ;;  %v595_v10 = vsel %vm507_vm15, %v2273_v51, %v587_v6  ;;  %v1173_v11 = vsel %vm1157_vm1, %v2275_v52, %v1165_v36 }
 0x106   : > { %1674 = vst.msk [vmem:[%s2296_s6 + $0x47] sm:$0x1] %vm1061_vm0, %v1426_v35  ;;  %v1526_v49 = vcombine.high %v1174_v37, %v1174_v37  ;;  %v1533_v9 = vrot.slane %v1174_v37, %v2251_v13  ;;  %1678 = vst.msk [vmem:[%s2296_s6 + $0x4f] sm:$0x1] %vm1061_vm0, %v1427_v40  ;;  %v962_v12 = vrot.slane %v948_v7, %v2251_v13 }
 0x107   : > { %v963_v14 = vcombine.high %v955_v8, %v955_v8  ;;  %v971_v50 = vrot.slane %v955_v8, %v2251_v13  ;;  %v899_v15 = vcombine.high %v595_v10, %v595_v10  ;;  %v906_v51 = vrot.slane %v595_v10, %v2251_v13 }
 0x108   : > { %v1540_v16 = vrot.slane %v1526_v49, %v2251_v13  ;;  %v1541_v17 = vcombine.high %v1533_v9, %v1533_v9  ;;  %v1549_v18 = vrot.slane %v1533_v9, %v2251_v13  ;;  %v964_v52 = vcombine.high %v962_v12, %v962_v12 }
 0x109   : > { %v978_v19 = vrot.slane %v962_v12, %v2251_v13  ;;  %v985_v20 = vrot.slane %v963_v14, %v2251_v13  ;;  %v993_v21 = vcombine.high %v971_v50, %v971_v50  ;;  %1118 = vst.msk [vmem:[%s2296_s6 + $0x70] sm:$0x1] %vm1061_vm0, %v971_v50  ;;  %v913_v28 = vrot.slane %v899_v15, %v2251_v13 }
 0x10a   : > { %v1542_v22 = vcombine.high %v1540_v16, %v1540_v16  ;;  %v1556_v23 = vrot.slane %v1540_v16, %v2251_v13  ;;  %v1563_v24 = vrot.slane %v1541_v17, %v2251_v13  ;;  %v1571_v25 = vcombine.high %v1549_v18, %v1549_v18  ;;  %1695 = vst.msk [vmem:[%s2296_s6 + $0x71] sm:$0x1] %vm1061_vm0, %v1549_v18 }
 0x10b   : > { %v992_v26 = vrot.slane %v964_v52, %v2251_v13  ;;  %v994_v41 = vcombine.high %v978_v19, %v978_v19  ;;  %v995_v27 = vcombine.high %v985_v20, %v985_v20  ;;  %1119 = vst.msk [vmem:[%s2296_s6 + $0x72] sm:$0x1] %vm1061_vm0, %v985_v20  ;;  %1120 = vst.msk [vmem:[%s2296_s6 + $0x74] sm:$0x1] %vm1061_vm0, %v993_v21 }
 0x10c   : > { %1122 = vst.msk [vmem:[%s2296_s6 + $0x78] sm:$0x1] %vm1061_vm0, %v978_v19  ;;  %v1570_v29 = vrot.slane %v1542_v22, %v2251_v13  ;;  %v1572_v30 = vcombine.high %v1556_v23, %v1556_v23  ;;  %v1573_v31 = vcombine.high %v1563_v24, %v1563_v24  ;;  %1696 = vst.msk [vmem:[%s2296_s6 + $0x73] sm:$0x1] %vm1061_vm0, %v1563_v24 }
 0x10d   : > { %1697 = vst.msk [vmem:[%s2296_s6 + $0x75] sm:$0x1] %vm1061_vm0, %v1571_v25  ;;  %1699 = vst.msk [vmem:[%s2296_s6 + $0x79] sm:$0x1] %vm1061_vm0, %v1556_v23  ;;  %v914_v32 = vcombine.high %v906_v51, %v906_v51  ;;  %v996_v33 = vcombine.high %v992_v26, %v992_v26  ;;  %v915_v34 = vcombine.high %v913_v28, %v913_v28 }
 0x10e   : > { %1121 = vst.msk [vmem:[%s2296_s6 + $0x76] sm:$0x1] %vm1061_vm0, %v995_v27  ;;  %1123 = vst.msk [vmem:[%s2296_s6 + $0x7a] sm:$0x1] %vm1061_vm0, %v992_v26  ;;  %v922_v42 = vrot.slane %v906_v51, %v2251_v13  ;;  %v929_v43 = vrot.slane %v913_v28, %v2251_v13  ;;  %v1574_v44 = vcombine.high %v1570_v29, %v1570_v29 }
 0x10f   : > { %1124 = vst.msk [vmem:[%s2296_s6 + $0x7c] sm:$0x1] %vm1061_vm0, %v994_v41  ;;  %1698 = vst.msk [vmem:[%s2296_s6 + $0x77] sm:$0x1] %vm1061_vm0, %v1573_v31  ;;  %v936_v45 = vrot.slane %v914_v32, %v2251_v13  ;;  %v1477_v46 = vcombine.high %v1173_v11, %v1173_v11  ;;  %v1484_v47 = vrot.slane %v1173_v11, %v2251_v13 }
 0x110   : > { %1700 = vst.msk [vmem:[%s2296_s6 + $0x7b] sm:$0x1] %vm1061_vm0, %v1570_v29  ;;  %1701 = vst.msk [vmem:[%s2296_s6 + $0x7d] sm:$0x1] %vm1061_vm0, %v1572_v30  ;;  %v943_v48 = vrot.slane %v915_v34, %v2251_v13  ;;  %v944_v53 = vcombine.high %v922_v42, %v922_v42  ;;  %v945_v54 = vcombine.high %v929_v43, %v929_v43 }
 0x111   : > { %1125 = vst.msk [vmem:[%s2296_s6 + $0x7e] sm:$0x1] %vm1061_vm0, %v996_v33  ;;  %1110 = vst.msk [vmem:[%s2296_s6 + $0x60] sm:$0x1] %vm1061_vm0, %v922_v42  ;;  %v946_v38 = vcombine.high %v936_v45, %v936_v45  ;;  %v1491_v55 = vrot.slane %v1477_v46, %v2251_v13  ;;  %v1492_v56 = vcombine.high %v1484_v47, %v1484_v47 }
 0x112   : > { %1114 = vst.msk [vmem:[%s2296_s6 + $0x68] sm:$0x1] %vm1061_vm0, %v929_v43  ;;  %1702 = vst.msk [vmem:[%s2296_s6 + $0x7f] sm:$0x1] %vm1061_vm0, %v1574_v44  ;;  %v1500_v57 = vrot.slane %v1484_v47, %v2251_v13  ;;  %v947_v58 = vcombine.high %v943_v48, %v943_v48 }
 0x113   : > { %1111 = vst.msk [vmem:[%s2296_s6 + $0x62] sm:$0x1] %vm1061_vm0, %v936_v45  ;;  %1112 = vst.msk [vmem:[%s2296_s6 + $0x64] sm:$0x1] %vm1061_vm0, %v944_v53  ;;  %v1493_v59 = vcombine.high %v1491_v55, %v1491_v55  ;;  %v1507_v60 = vrot.slane %v1491_v55, %v2251_v13  ;;  %v1514_v61 = vrot.slane %v1492_v56, %v2251_v13 }
 0x114   : > { %1115 = vst.msk [vmem:[%s2296_s6 + $0x6a] sm:$0x1] %vm1061_vm0, %v943_v48  ;;  %1116 = vst.msk [vmem:[%s2296_s6 + $0x6c] sm:$0x1] %vm1061_vm0, %v945_v54  ;;  %v1522_v62 = vcombine.high %v1500_v57, %v1500_v57 }
 0x115   : > { %1113 = vst.msk [vmem:[%s2296_s6 + $0x66] sm:$0x1] %vm1061_vm0, %v946_v38  ;;  %1687 = vst.msk [vmem:[%s2296_s6 + $0x61] sm:$0x1] %vm1061_vm0, %v1500_v57  ;;  %v1521_v39 = vrot.slane %v1493_v59, %v2251_v13  ;;  %v1523_v63 = vcombine.high %v1507_v60, %v1507_v60  ;;  %v1524_v0 = vcombine.high %v1514_v61, %v1514_v61 }
 0x116   : > { %1117 = vst.msk [vmem:[%s2296_s6 + $0x6e] sm:$0x1] %vm1061_vm0, %v947_v58  ;;  %1688 = vst.msk [vmem:[%s2296_s6 + $0x63] sm:$0x1] %vm1061_vm0, %v1514_v61 }
 0x117   : > { %1689 = vst.msk [vmem:[%s2296_s6 + $0x65] sm:$0x1] %vm1061_vm0, %v1522_v62  ;;  %1691 = vst.msk [vmem:[%s2296_s6 + $0x69] sm:$0x1] %vm1061_vm0, %v1507_v60  ;;  %v1525_v1 = vcombine.high %v1521_v39, %v1521_v39 }
 0x118   : > { %1690 = vst.msk [vmem:[%s2296_s6 + $0x67] sm:$0x1] %vm1061_vm0, %v1524_v0  ;;  %1692 = vst.msk [vmem:[%s2296_s6 + $0x6b] sm:$0x1] %vm1061_vm0, %v1521_v39 }
 0x119   : > { %1693 = vst.msk [vmem:[%s2296_s6 + $0x6d] sm:$0x1] %vm1061_vm0, %v1523_v63  ;;  %1694 = vst.msk [vmem:[%s2296_s6 + $0x6f] sm:$0x1] %vm1061_vm0, %v1525_v1 }
 0x11a   : > { %s1875_s9 = sshll.u32 %s2018_s18, 3  ;;  %s1876_s10 = sshll.u32 %s2022_s19, 7 }
 0x11b   : > { %s1716_s11 = sadd.s32 %s1876_s10, %s1875_s9  ;;  %s1735_s12 = sshll.u32 %s2296_s6, 4  ;;  %s1736_s12 = int_to_ptr.vmem [resolvable:$true] %s1735_s12 }
 0x11c   : > { %s1877_s13 = sshll.u32 %s1716_s11, 5  ;;  %s2038_s24 = smov 256  }
 0x11d   : > { %s1718_s27 = scalar_lea.hbm %s2758_s4, %s1877_s13  ;;  %1880 = sst [smem:[#allocation6]] (%p2130_p8), %s2038_s24 }
 0x11e   : > { %s2039_s28 = smov 512   ;;  %s2040_s5 = smov 8  }
 0x11f   : > { %1881 = sst [smem:[#allocation6 + $0x1]] (%p2130_p8), %s2039_s28  ;;  %s2041_s18 = smov 32  }
 0x120   : > { %1882 = sst [smem:[#allocation6 + $0x2]] (%p2130_p8), %s2040_s5  ;;  %s2042_s19 = smov 2  }
 0x121   : > { %1883 = sst [smem:[#allocation6 + $0x3]] (%p2130_p8), %s2041_s18  ;;  %s2043_s6 = smov [#allocation5]  }
 0x122   : > { %1884 = sst [smem:[#allocation6 + $0x4]] (%p2130_p8), %s2041_s18  ;;  %s2044_s9 = smov 0  }
 0x123   : > { %1885 = sst [smem:[#allocation6 + $0x5]] (%p2130_p8), %s2042_s19 }
 0x124   : > { %1886 = dma.general (%p2130_p8), %s1736_s12, 2048, %s1718_s27, %s1704_s7, %s2043_s6, [#allocation6], %s2044_s9, 0  }
 0x125 PF: > { %p1892_p1 = scmp.ge.s32.totalorder %s2034_s22, 2  ;;  %s1763_s10 = sand.u32 1, %s2006_s15  }
 0x126   : > { %s1764_s11 = scalar_lea.sflag [#allocation4], %s1763_s10 }
 0x127   : > { %p1889_p2 = pnand %p1892_p1, %p2134_p9 }
 0x129   : > { %2001 = dma.done.wait (!%p1889_p2), %s1764_s11, 2048  }
 0x12a   : > { %2003 = vsyncadd (!%p1889_p2), %s1764_s11, 4294965248  ;;  %s17_s22 = sadd.s32 1, %s2034_s22   ;;  %s2762_s15 = smov %s2010_s16 }
 0x12b   : > { %p14_p3 = scmp.ge.s32.totalorder %s17_s22, 6   ;;  %s2763_s16 = smov %s2014_s17 }
 0x12c   : > { %s2764_s17 = smov %s2142_s8  ;;  %s2765_s18 = smov %s2026_s20 }
 0x12d   : > { %s2766_s19 = smov %s2030_s21  ;;  %s2767_s20 = smov %s2770_s25 }
 0x12e   : > { %s2768_s21 = smov %s2774_s26  ;;  %16 = sbr.rel (!%p14_p3) target bundleno = 5 (0x5), region = 120 }
 0x135   :  { %1769 = vsyncpa [#allocation4], 1 }
 0x136   :  { %1771 = vsyncpa [#allocation4 + $0x1], 1 }

</bundles_post_ra>
